<compile_context>
chip_gen: v7x
topology: tpu7x:2x2x1
jax: 0.10.0
libtpu: 0.0.40
codegen_flags: <defaults>
</compile_context>

<pallas_src>
import functools

import jax
import jax.numpy as jnp
from jax import lax
from jax.experimental import pallas as pl
from jax.experimental.pallas import tpu as pltpu


def _mhsa_kernel(q_ref, k_ref, wq_ref, wkv_ref, out_ref, scores_ref,
                 *, num_heads, key_dim, num_units, matmul_dtype):
    Nb, T_q, Dq = q_ref.shape
    _, T_k, Dk = k_ref.shape
    d = num_units // num_heads
    scale = 1.0 / (float(key_dim) ** 0.5)   # PyTorch scales by sqrt(key_dim), NOT sqrt(d)
    mm = matmul_dtype

    # --- Projections: one big matmul for Q, one fused matmul for K|V. ---
    q2 = q_ref[...].reshape(Nb * T_q, Dq).astype(mm)
    k2 = k_ref[...].reshape(Nb * T_k, Dk).astype(mm)

    Q = jnp.dot(q2, wq_ref[...].astype(mm),
                preferred_element_type=jnp.float32)          # (Nb*T_q, U)
    KV = jnp.dot(k2, wkv_ref[...].astype(mm),
                 preferred_element_type=jnp.float32)         # (Nb*T_k, 2U)

    Q3 = Q.reshape(Nb, T_q, num_units)
    K3 = KV[:, :num_units].reshape(Nb, T_k, num_units)
    V3 = KV[:, num_units:].reshape(Nb, T_k, num_units)

    # --- Per-head attention (num_heads is small & static). ---
    out_parts = []
    score_parts = []
    for h in range(num_heads):
        sl = slice(h * d, (h + 1) * d)
        Qh = Q3[:, :, sl].astype(mm)                         # (Nb, T_q, d)
        Kh = K3[:, :, sl].astype(mm)                         # (Nb, T_k, d)
        Vh = V3[:, :, sl].astype(mm)                         # (Nb, T_k, d)

        # Batched Q @ K^T without materializing a transpose.
        s = lax.dot_general(
            Qh, Kh,
            dimension_numbers=(((2,), (2,)), ((0,), (0,))),
            preferred_element_type=jnp.float32) * scale      # (Nb, T_q, T_k)

        # Numerically-stable softmax over the key axis, math in f32.
        s = s - jnp.max(s, axis=-1, keepdims=True)
        e = jnp.exp(s)
        p = e * pl.reciprocal(jnp.sum(e, axis=-1, keepdims=True), approx=True)
        score_parts.append(p)

        o = lax.dot_general(
            p.astype(mm), Vh,
            dimension_numbers=(((2,), (1,)), ((0,), (0,))),
            preferred_element_type=jnp.float32)              # (Nb, T_q, d)
        out_parts.append(o)

    # Single lane-dense stores per grid step.
    out_ref[...] = jnp.concatenate(out_parts, axis=-1).astype(out_ref.dtype)
    scores_ref[...] = jnp.concatenate(score_parts, axis=-1).astype(scores_ref.dtype)


def _pick_batch_block(N, T_q, target_rows=256, min_blocks=2):
    """Largest divisor Nb of N with Nb*T_q <= target_rows, preferring to keep
    >= min_blocks grid steps so both v7x TensorCores get work."""
    divisors = [nb for nb in range(1, N + 1) if N % nb == 0]
    fits = [nb for nb in divisors if nb * T_q <= target_rows] or [1]
    multi = [nb for nb in fits if N // nb >= min_blocks]
    return max(multi) if multi else max(fits)


def multi_head_style_attention(query, key, w_query, w_key, w_value,
                               *, num_heads, key_dim,
                               batch_block=None, matmul_dtype=jnp.float32):
    """query: (N, T_q, Dq); key: (N, T_k, Dk); w_*: (D_in, num_units)."""
    N, T_q, Dq = query.shape
    _, T_k, Dk = key.shape
    num_units = w_query.shape[1]
    assert num_units % num_heads == 0

    Nb = batch_block if batch_block is not None else _pick_batch_block(N, T_q)
    assert N % Nb == 0

    # Fuse K and V projections into one (Dk, 2U) weight (wrapper-side, free).
    w_kv = jnp.concatenate([w_key, w_value], axis=1)

    kernel = functools.partial(_mhsa_kernel, num_heads=num_heads, key_dim=key_dim,
                               num_units=num_units, matmul_dtype=matmul_dtype)

    # TODO(synk): for workloads with large T_k, tile T_k with an "arbitrary" grid
    # axis and an online (flash-style) softmax instead of full-T_k score blocks.
    out, scores_packed = pl.pallas_call(
        kernel,
        out_shape=(
            jax.ShapeDtypeStruct((N, T_q, num_units), query.dtype),
            jax.ShapeDtypeStruct((N, T_q, num_heads * T_k), jnp.float32),
        ),
        grid_spec=pltpu.PrefetchScalarGridSpec(
            num_scalar_prefetch=0,
            grid=(N // Nb,),
            in_specs=[
                pl.BlockSpec((Nb, T_q, Dq), lambda n: (n, 0, 0)),
                pl.BlockSpec((Nb, T_k, Dk), lambda n: (n, 0, 0)),
                # Constant-index weight blocks (resident across the grid).
                pl.BlockSpec((Dq, num_units), lambda n: (0, 0)),
                pl.BlockSpec((Dk, 2 * num_units), lambda n: (0, 0)),
            ],
            out_specs=[
                pl.BlockSpec((Nb, T_q, num_units), lambda n: (n, 0, 0)),
                pl.BlockSpec((Nb, T_q, num_heads * T_k), lambda n: (n, 0, 0)),
            ],
        ),
        compiler_params=pltpu.CompilerParams(
            dimension_semantics=("parallel",),
            vmem_limit_bytes=32 * 1024 * 1024,
        ),
    )(query, key, w_query, w_kv)

    # Layout plumbing outside the kernel: (N, T_q, H*T_k) -> (H, N, T_q, T_k).
    scores = scores_packed.reshape(N, T_q, num_heads, T_k).transpose(2, 0, 1, 3)
    return out, scores


def _reference(query, key, w_query, w_key, w_value, *, num_heads, key_dim):
    # Pure-JAX mirror of the PyTorch forward, for correctness checking.
    Q = query @ w_query
    K = key @ w_key
    V = key @ w_value
    Qh = jnp.stack(jnp.split(Q, num_heads, axis=2), axis=0)   # (h, N, T_q, d)
    Kh = jnp.stack(jnp.split(K, num_heads, axis=2), axis=0)
    Vh = jnp.stack(jnp.split(V, num_heads, axis=2), axis=0)
    s = jnp.einsum('hnqd,hnkd->hnqk', Qh, Kh) / (key_dim ** 0.5)
    p = jax.nn.softmax(s, axis=3)
    o = jnp.einsum('hnqk,hnkd->hnqd', p, Vh)
    o = jnp.concatenate(jnp.split(o, num_heads, axis=0), axis=3)[0]
    return o, p


if __name__ == "__main__":
    # Small shapes consistent with the module's forward.
    N, T_q, T_k = 16, 8, 8
    query_dim, key_dim = 32, 16
    num_units, num_heads = 32, 4

    # bf16 MXU operands on v6e/v7x (f32 accumulation, f32 softmax); f32 on v5e & others.
    kind = jax.devices()[0].device_kind.lower()
    matmul_dtype = jnp.bfloat16 if ("v6" in kind or "v7" in kind) else jnp.float32

    root = jax.random.PRNGKey(0)
    k_q, k_k, k_wq, k_wk, k_wv = jax.random.split(root, 5)

    query = jax.random.normal(k_q, (N, T_q, query_dim), dtype=jnp.float32)
    key = jax.random.normal(k_k, (N, T_k, key_dim), dtype=jnp.float32)

    # Deterministic synthetic parameters, stored as (in_features, out_features).
    w_query = 0.1 * jax.random.normal(k_wq, (query_dim, num_units), dtype=jnp.float32)
    w_key = 0.1 * jax.random.normal(k_wk, (key_dim, num_units), dtype=jnp.float32)
    w_value = 0.1 * jax.random.normal(k_wv, (key_dim, num_units), dtype=jnp.float32)

    out, scores = multi_head_style_attention(
        query, key, w_query, w_key, w_value,
        num_heads=num_heads, key_dim=key_dim, matmul_dtype=matmul_dtype)
    jax.block_until_ready((out, scores))

    ref_out, ref_scores = _reference(
        query, key, w_query, w_key, w_value,
        num_heads=num_heads, key_dim=key_dim)

    tol = 2e-2 if matmul_dtype == jnp.bfloat16 else 2e-3
    assert out.shape == (N, T_q, num_units)
    assert scores.shape == (num_heads, N, T_q, T_k)
    assert jnp.allclose(out, ref_out, atol=tol, rtol=tol)
    assert jnp.allclose(scores, ref_scores, atol=tol, rtol=tol)

    print("KERNEL_OK")
</pallas_src>

<mosaic_0001>
module attributes {stable_mosaic.version = 11 : i64} {
  func.func @_mhsa_kernel(%arg0: i32, %arg1: memref<8x8x32xf32, #tpu.memory_space<vmem>>, %arg2: memref<8x8x16xf32, #tpu.memory_space<vmem>>, %arg3: memref<32x32xf32, #tpu.memory_space<vmem>>, %arg4: memref<16x64xf32, #tpu.memory_space<vmem>>, %arg5: memref<8x8x32xf32, #tpu.memory_space<vmem>>, %arg6: memref<8x8x32xf32, #tpu.memory_space<vmem>>) attributes {dimension_semantics = [#tpu.dimension_semantics<parallel>], iteration_bounds = array<i64: 2>, scalar_prefetch = 0 : i64, scratch_operands = 0 : i64, tpu.core_type = #tpu.core_type<tc>, window_params = [{transform_indices = @transform_0, window_bounds = array<i64: 8, 8, 32>}, {transform_indices = @transform_1, window_bounds = array<i64: 8, 8, 16>}, {pipeline_mode = #tpu.pipeline_mode<synchronous>, transform_indices = @transform_2, window_bounds = array<i64: 32, 32>}, {pipeline_mode = #tpu.pipeline_mode<synchronous>, transform_indices = @transform_3, window_bounds = array<i64: 16, 64>}, {transform_indices = @transform_4, window_bounds = array<i64: 8, 8, 32>}, {transform_indices = @transform_5, window_bounds = array<i64: 8, 8, 32>}]} {
    %c0 = arith.constant 0 : index
    %c0_0 = arith.constant 0 : index
    %c0_1 = arith.constant 0 : index
    %0 = vector.load %arg1[%c0, %c0_0, %c0_1] : memref<8x8x32xf32, #tpu.memory_space<vmem>>, vector<8x8x32xf32>
    %1 = vector.shape_cast %0 : vector<8x8x32xf32> to vector<64x32xf32>
    %c0_2 = arith.constant 0 : index
    %c0_3 = arith.constant 0 : index
    %c0_4 = arith.constant 0 : index
    %2 = vector.load %arg2[%c0_2, %c0_3, %c0_4] : memref<8x8x16xf32, #tpu.memory_space<vmem>>, vector<8x8x16xf32>
    %3 = vector.shape_cast %2 : vector<8x8x16xf32> to vector<64x16xf32>
    %c0_5 = arith.constant 0 : index
    %c0_6 = arith.constant 0 : index
    %4 = vector.load %arg3[%c0_5, %c0_6] : memref<32x32xf32, #tpu.memory_space<vmem>>, vector<32x32xf32>
    %cst = arith.constant dense<0.000000e+00> : vector<64x32xf32>
    %5 = tpu.matmul %1, %4, %cst {dimension_numbers = #tpu.dot_dimension_numbers<[1], [0], [0], [1], [0, 0, 1, 1], [], []>} : vector<64x32xf32>, vector<32x32xf32>, vector<64x32xf32> -> vector<64x32xf32>
    %c0_7 = arith.constant 0 : index
    %c0_8 = arith.constant 0 : index
    %6 = vector.load %arg4[%c0_7, %c0_8] : memref<16x64xf32, #tpu.memory_space<vmem>>, vector<16x64xf32>
    %cst_9 = arith.constant dense<0.000000e+00> : vector<64x64xf32>
    %7 = tpu.matmul %3, %6, %cst_9 {dimension_numbers = #tpu.dot_dimension_numbers<[1], [0], [0], [1], [0, 0, 1, 1], [], []>} : vector<64x16xf32>, vector<16x64xf32>, vector<64x64xf32> -> vector<64x64xf32>
    %8 = vector.shape_cast %5 : vector<64x32xf32> to vector<8x8x32xf32>
    %9 = vector.extract_strided_slice %7 {offsets = [0, 0], sizes = [64, 32], strides = [1, 1]} : vector<64x64xf32> to vector<64x32xf32>
    %10 = vector.shape_cast %9 : vector<64x32xf32> to vector<8x8x32xf32>
    %11 = vector.extract_strided_slice %7 {offsets = [0, 32], sizes = [64, 32], strides = [1, 1]} : vector<64x64xf32> to vector<64x32xf32>
    %12 = vector.shape_cast %11 : vector<64x32xf32> to vector<8x8x32xf32>
    %13 = vector.extract_strided_slice %8 {offsets = [0, 0, 0], sizes = [8, 8, 8], strides = [1, 1, 1]} : vector<8x8x32xf32> to vector<8x8x8xf32>
    %14 = vector.extract_strided_slice %10 {offsets = [0, 0, 0], sizes = [8, 8, 8], strides = [1, 1, 1]} : vector<8x8x32xf32> to vector<8x8x8xf32>
    %15 = vector.extract_strided_slice %12 {offsets = [0, 0, 0], sizes = [8, 8, 8], strides = [1, 1, 1]} : vector<8x8x32xf32> to vector<8x8x8xf32>
    %cst_10 = arith.constant dense<0.000000e+00> : vector<8x8x8xf32>
    %16 = tpu.matmul %13, %14, %cst_10 {dimension_numbers = #tpu.dot_dimension_numbers<[2], [2], [1], [1], [0, 0, 0, 1, 1, 1], [0], [0]>} : vector<8x8x8xf32>, vector<8x8x8xf32>, vector<8x8x8xf32> -> vector<8x8x8xf32>
    %cst_11 = arith.constant 2.500000e-01 : f32
    %17 = vector.broadcast %cst_11 : f32 to vector<8x8x8xf32>
    %18 = arith.mulf %16, %17 : vector<8x8x8xf32>
    %cst_12 = arith.constant dense<0xFF800000> : vector<8x8xf32>
    %19 = vector.multi_reduction <maximumf>, %18, %cst_12 [2] : vector<8x8x8xf32> to vector<8x8xf32>
    %20 = vector.shape_cast %19 : vector<8x8xf32> to vector<8x8x1xf32>
    %21 = vector.broadcast %20 : vector<8x8x1xf32> to vector<8x8x8xf32>
    %22 = arith.subf %18, %21 : vector<8x8x8xf32>
    %23 = math.exp %22 : vector<8x8x8xf32>
    %cst_13 = arith.constant dense<0.000000e+00> : vector<8x8xf32>
    %24 = vector.multi_reduction <add>, %23, %cst_13 [2] : vector<8x8x8xf32> to vector<8x8xf32>
    %25 = vector.shape_cast %24 : vector<8x8xf32> to vector<8x8x1xf32>
    %26 = tpu.reciprocal %25 {approx = true} : vector<8x8x1xf32> -> vector<8x8x1xf32>
    %27 = vector.broadcast %26 : vector<8x8x1xf32> to vector<8x8x8xf32>
    %28 = arith.mulf %23, %27 : vector<8x8x8xf32>
    %cst_14 = arith.constant dense<0.000000e+00> : vector<8x8x8xf32>
    %29 = tpu.matmul %28, %15, %cst_14 {dimension_numbers = #tpu.dot_dimension_numbers<[2], [1], [1], [2], [0, 0, 0, 1, 1, 2], [0], [0]>} : vector<8x8x8xf32>, vector<8x8x8xf32>, vector<8x8x8xf32> -> vector<8x8x8xf32>
    %30 = vector.extract_strided_slice %8 {offsets = [0, 0, 8], sizes = [8, 8, 8], strides = [1, 1, 1]} : vector<8x8x32xf32> to vector<8x8x8xf32>
    %31 = vector.extract_strided_slice %10 {offsets = [0, 0, 8], sizes = [8, 8, 8], strides = [1, 1, 1]} : vector<8x8x32xf32> to vector<8x8x8xf32>
    %32 = vector.extract_strided_slice %12 {offsets = [0, 0, 8], sizes = [8, 8, 8], strides = [1, 1, 1]} : vector<8x8x32xf32> to vector<8x8x8xf32>
    %cst_15 = arith.constant dense<0.000000e+00> : vector<8x8x8xf32>
    %33 = tpu.matmul %30, %31, %cst_15 {dimension_numbers = #tpu.dot_dimension_numbers<[2], [2], [1], [1], [0, 0, 0, 1, 1, 1], [0], [0]>} : vector<8x8x8xf32>, vector<8x8x8xf32>, vector<8x8x8xf32> -> vector<8x8x8xf32>
    %cst_16 = arith.constant 2.500000e-01 : f32
    %34 = vector.broadcast %cst_16 : f32 to vector<8x8x8xf32>
    %35 = arith.mulf %33, %34 : vector<8x8x8xf32>
    %cst_17 = arith.constant dense<0xFF800000> : vector<8x8xf32>
    %36 = vector.multi_reduction <maximumf>, %35, %cst_17 [2] : vector<8x8x8xf32> to vector<8x8xf32>
    %37 = vector.shape_cast %36 : vector<8x8xf32> to vector<8x8x1xf32>
    %38 = vector.broadcast %37 : vector<8x8x1xf32> to vector<8x8x8xf32>
    %39 = arith.subf %35, %38 : vector<8x8x8xf32>
    %40 = math.exp %39 : vector<8x8x8xf32>
    %cst_18 = arith.constant dense<0.000000e+00> : vector<8x8xf32>
    %41 = vector.multi_reduction <add>, %40, %cst_18 [2] : vector<8x8x8xf32> to vector<8x8xf32>
    %42 = vector.shape_cast %41 : vector<8x8xf32> to vector<8x8x1xf32>
    %43 = tpu.reciprocal %42 {approx = true} : vector<8x8x1xf32> -> vector<8x8x1xf32>
    %44 = vector.broadcast %43 : vector<8x8x1xf32> to vector<8x8x8xf32>
    %45 = arith.mulf %40, %44 : vector<8x8x8xf32>
    %cst_19 = arith.constant dense<0.000000e+00> : vector<8x8x8xf32>
    %46 = tpu.matmul %45, %32, %cst_19 {dimension_numbers = #tpu.dot_dimension_numbers<[2], [1], [1], [2], [0, 0, 0, 1, 1, 2], [0], [0]>} : vector<8x8x8xf32>, vector<8x8x8xf32>, vector<8x8x8xf32> -> vector<8x8x8xf32>
    %47 = vector.extract_strided_slice %8 {offsets = [0, 0, 16], sizes = [8, 8, 8], strides = [1, 1, 1]} : vector<8x8x32xf32> to vector<8x8x8xf32>
    %48 = vector.extract_strided_slice %10 {offsets = [0, 0, 16], sizes = [8, 8, 8], strides = [1, 1, 1]} : vector<8x8x32xf32> to vector<8x8x8xf32>
    %49 = vector.extract_strided_slice %12 {offsets = [0, 0, 16], sizes = [8, 8, 8], strides = [1, 1, 1]} : vector<8x8x32xf32> to vector<8x8x8xf32>
    %cst_20 = arith.constant dense<0.000000e+00> : vector<8x8x8xf32>
    %50 = tpu.matmul %47, %48, %cst_20 {dimension_numbers = #tpu.dot_dimension_numbers<[2], [2], [1], [1], [0, 0, 0, 1, 1, 1], [0], [0]>} : vector<8x8x8xf32>, vector<8x8x8xf32>, vector<8x8x8xf32> -> vector<8x8x8xf32>
    %cst_21 = arith.constant 2.500000e-01 : f32
    %51 = vector.broadcast %cst_21 : f32 to vector<8x8x8xf32>
    %52 = arith.mulf %50, %51 : vector<8x8x8xf32>
    %cst_22 = arith.constant dense<0xFF800000> : vector<8x8xf32>
    %53 = vector.multi_reduction <maximumf>, %52, %cst_22 [2] : vector<8x8x8xf32> to vector<8x8xf32>
    %54 = vector.shape_cast %53 : vector<8x8xf32> to vector<8x8x1xf32>
    %55 = vector.broadcast %54 : vector<8x8x1xf32> to vector<8x8x8xf32>
    %56 = arith.subf %52, %55 : vector<8x8x8xf32>
    %57 = math.exp %56 : vector<8x8x8xf32>
    %cst_23 = arith.constant dense<0.000000e+00> : vector<8x8xf32>
    %58 = vector.multi_reduction <add>, %57, %cst_23 [2] : vector<8x8x8xf32> to vector<8x8xf32>
    %59 = vector.shape_cast %58 : vector<8x8xf32> to vector<8x8x1xf32>
    %60 = tpu.reciprocal %59 {approx = true} : vector<8x8x1xf32> -> vector<8x8x1xf32>
    %61 = vector.broadcast %60 : vector<8x8x1xf32> to vector<8x8x8xf32>
    %62 = arith.mulf %57, %61 : vector<8x8x8xf32>
    %cst_24 = arith.constant dense<0.000000e+00> : vector<8x8x8xf32>
    %63 = tpu.matmul %62, %49, %cst_24 {dimension_numbers = #tpu.dot_dimension_numbers<[2], [1], [1], [2], [0, 0, 0, 1, 1, 2], [0], [0]>} : vector<8x8x8xf32>, vector<8x8x8xf32>, vector<8x8x8xf32> -> vector<8x8x8xf32>
    %64 = vector.extract_strided_slice %8 {offsets = [0, 0, 24], sizes = [8, 8, 8], strides = [1, 1, 1]} : vector<8x8x32xf32> to vector<8x8x8xf32>
    %65 = vector.extract_strided_slice %10 {offsets = [0, 0, 24], sizes = [8, 8, 8], strides = [1, 1, 1]} : vector<8x8x32xf32> to vector<8x8x8xf32>
    %66 = vector.extract_strided_slice %12 {offsets = [0, 0, 24], sizes = [8, 8, 8], strides = [1, 1, 1]} : vector<8x8x32xf32> to vector<8x8x8xf32>
    %cst_25 = arith.constant dense<0.000000e+00> : vector<8x8x8xf32>
    %67 = tpu.matmul %64, %65, %cst_25 {dimension_numbers = #tpu.dot_dimension_numbers<[2], [2], [1], [1], [0, 0, 0, 1, 1, 1], [0], [0]>} : vector<8x8x8xf32>, vector<8x8x8xf32>, vector<8x8x8xf32> -> vector<8x8x8xf32>
    %cst_26 = arith.constant 2.500000e-01 : f32
    %68 = vector.broadcast %cst_26 : f32 to vector<8x8x8xf32>
    %69 = arith.mulf %67, %68 : vector<8x8x8xf32>
    %cst_27 = arith.constant dense<0xFF800000> : vector<8x8xf32>
    %70 = vector.multi_reduction <maximumf>, %69, %cst_27 [2] : vector<8x8x8xf32> to vector<8x8xf32>
    %71 = vector.shape_cast %70 : vector<8x8xf32> to vector<8x8x1xf32>
    %72 = vector.broadcast %71 : vector<8x8x1xf32> to vector<8x8x8xf32>
    %73 = arith.subf %69, %72 : vector<8x8x8xf32>
    %74 = math.exp %73 : vector<8x8x8xf32>
    %cst_28 = arith.constant dense<0.000000e+00> : vector<8x8xf32>
    %75 = vector.multi_reduction <add>, %74, %cst_28 [2] : vector<8x8x8xf32> to vector<8x8xf32>
    %76 = vector.shape_cast %75 : vector<8x8xf32> to vector<8x8x1xf32>
    %77 = tpu.reciprocal %76 {approx = true} : vector<8x8x1xf32> -> vector<8x8x1xf32>
    %78 = vector.broadcast %77 : vector<8x8x1xf32> to vector<8x8x8xf32>
    %79 = arith.mulf %74, %78 : vector<8x8x8xf32>
    %cst_29 = arith.constant dense<0.000000e+00> : vector<8x8x8xf32>
    %80 = tpu.matmul %79, %66, %cst_29 {dimension_numbers = #tpu.dot_dimension_numbers<[2], [1], [1], [2], [0, 0, 0, 1, 1, 2], [0], [0]>} : vector<8x8x8xf32>, vector<8x8x8xf32>, vector<8x8x8xf32> -> vector<8x8x8xf32>
    %81 = tpu.concatenate %29, %46, %63, %80 in 2 : vector<8x8x8xf32>, vector<8x8x8xf32>, vector<8x8x8xf32>, vector<8x8x8xf32> -> vector<8x8x32xf32>
    %c0_30 = arith.constant 0 : index
    %c0_31 = arith.constant 0 : index
    %c0_32 = arith.constant 0 : index
    %82 = vector.load %arg5[%c0_30, %c0_31, %c0_32] : memref<8x8x32xf32, #tpu.memory_space<vmem>>, vector<8x8x32xf32>
    tpu.vector_store %arg5[%c0_30, %c0_31, %c0_32], %81 {strides = array<i32>} : memref<8x8x32xf32, #tpu.memory_space<vmem>>, vector<8x8x32xf32>,
    %83 = tpu.concatenate %28, %45, %62, %79 in 2 : vector<8x8x8xf32>, vector<8x8x8xf32>, vector<8x8x8xf32>, vector<8x8x8xf32> -> vector<8x8x32xf32>
    %c0_33 = arith.constant 0 : index
    %c0_34 = arith.constant 0 : index
    %c0_35 = arith.constant 0 : index
    %84 = vector.load %arg6[%c0_33, %c0_34, %c0_35] : memref<8x8x32xf32, #tpu.memory_space<vmem>>, vector<8x8x32xf32>
    tpu.vector_store %arg6[%c0_33, %c0_34, %c0_35], %83 {strides = array<i32>} : memref<8x8x32xf32, #tpu.memory_space<vmem>>, vector<8x8x32xf32>,
    return
  }
  func.func @transform_0(%arg0: i32) -> (i32, i32, i32) {
    %c0_i32 = arith.constant 0 : i32
    %c0_i32_0 = arith.constant 0 : i32
    %c0_i32_1 = arith.constant 0 : i32
    return %arg0, %c0_i32, %c0_i32_0 : i32, i32, i32
  }
  func.func @transform_1(%arg0: i32) -> (i32, i32, i32) {
    %c0_i32 = arith.constant 0 : i32
    %c0_i32_0 = arith.constant 0 : i32
    %c0_i32_1 = arith.constant 0 : i32
    return %arg0, %c0_i32, %c0_i32_0 : i32, i32, i32
  }
  func.func @transform_2(%arg0: i32) -> (i32, i32) {
    %c0_i32 = arith.constant 0 : i32
    %c0_i32_0 = arith.constant 0 : i32
    %c0_i32_1 = arith.constant 0 : i32
    return %c0_i32, %c0_i32_0 : i32, i32
  }
  func.func @transform_3(%arg0: i32) -> (i32, i32) {
    %c0_i32 = arith.constant 0 : i32
    %c0_i32_0 = arith.constant 0 : i32
    %c0_i32_1 = arith.constant 0 : i32
    return %c0_i32, %c0_i32_0 : i32, i32
  }
  func.func @transform_4(%arg0: i32) -> (i32, i32, i32) {
    %c0_i32 = arith.constant 0 : i32
    %c0_i32_0 = arith.constant 0 : i32
    %c0_i32_1 = arith.constant 0 : i32
    return %arg0, %c0_i32, %c0_i32_0 : i32, i32, i32
  }
  func.func @transform_5(%arg0: i32) -> (i32, i32, i32) {
    %c0_i32 = arith.constant 0 : i32
    %c0_i32_0 = arith.constant 0 : i32
    %c0_i32_1 = arith.constant 0 : i32
    return %arg0, %c0_i32, %c0_i32_0 : i32, i32, i32
  }
}

</mosaic_0001>

<bundles_post_ra>
// kernel: tpu_custom_call.1
= control target key start
LH: loop header
LB: loop body
LE: loop exit
PB: predicated region body
PF: predicated region fallthrough
CT: control target
= control target key end

     0   :  { %s8907_s0 = inlined_call_operand.hbm [shape: f32[16,8,32], index: 0, kind: input, shape index: {}]   ;;  %s8908_s1 = inlined_call_operand.hbm [shape: f32[16,8,16], index: 1, kind: input, shape index: {}]   ;;  %s8909_s2 = inlined_call_operand.hbm [shape: f32[32,32], index: 2, kind: input, shape index: {}]   ;;  %s8910_s3 = inlined_call_operand.hbm [shape: f32[16,64], index: 3, kind: input, shape index: {}]   ;;  %s8911_s4 = inlined_call_operand.hbm [shape: f32[16,8,32], index: 4, kind: output, shape index: {0}]   ;;  %s8912_s5 = inlined_call_operand.hbm [shape: f32[16,8,32], index: 5, kind: output, shape index: {1}]  }
   0x1   :  { %8931 = sst [smem:[#allocation36_spill]] %s8907_s0 }
   0x2   :  { %8932 = sst [smem:[#allocation37_spill]] %s8909_s2 }
   0x3   :  { %11 = vsyncpa [#allocation3], 0 }
   0x4   :  { %13 = vsyncpa [#allocation3 + $0x1], 0 }
   0x5   :  { %14 = vsyncpa [#allocation6], 0 }
   0x6   :  { %16 = vsyncpa [#allocation6 + $0x1], 0 }
   0x7   :  { %17 = vsyncpa [#allocation9], 0 }
   0x8   :  { %18 = vsyncpa [#allocation4], 0 }
   0x9   :  { %20 = vsyncpa [#allocation4 + $0x1], 0 }
   0xa   :  { %21 = vsyncpa [#allocation12], 0 }
   0xb   :  { %23 = vsyncpa [#allocation12 + $0x1], 0  ;;  %s7480_s18 = smov 0   ;;  %s7482_s19 = smov 0  }
   0xc   :  { %s7484_s20 = smov 0   ;;  %s7486_s21 = smov 0  }
   0xd LB: > { %s7501_s22 = sadd.s32 4294967295, %s7427_s21   ;;  %s6321_s23 = sadd.s32 4294967294, %s7427_s21   ;;  %s7427_s21 = sphi %s7486_s21, %s8990_s21   ;;  %s7423_s20 = sphi %s7484_s20, %s8989_s20   ;;  %s7419_s19 = sphi %s7482_s19, %s8988_s19   ;;  %s7415_s18 = sphi %s7480_s18, %s8987_s18  }
   0xe   : > { %p49_p0 = scmp.ne.s32.totalorder %s7419_s19, %s7415_s18  ;;  %p8913_p1 = scmp.eq.s32.totalorder %s7501_s22, 0 }
   0xf   : > { %p147_p3 = scmp.eq.s32.totalorder %s6321_s23, 1  ;;  %p6322_p5 = scmp.ge.s32.totalorder %s7427_s21, 1 }
  0x10   : > { %p7510_p4 = por %p8913_p1, %p49_p0  ;;  %p180_p7 = scmp.lt.s32.totalorder %s7427_s21, 3 }
  0x11   : > { %p7515_p6 = por %p147_p3, %p49_p0  ;;  %s7429_s27 = smov [#allocation7]  }
  0x12   : > { %s8933_s24 = scalar_select %p7510_p4, 1, 0 }
  0x13   : > { %s8934_s25 = scalar_select %p7515_p6, 1, 0 }
  0x14   : > { %p7520_p8 = pnand %p6322_p5, %p180_p7  ;;  %s192_s28 = sshll.u32 %s7429_s27, 4  ;;  %s7524_s28 = int_to_ptr.vmem [resolvable:$true] %s192_s28 }
  0x15   : > { %s7430_s30 = smov [#allocation8]   ;;  %s8937_s2 = sld [smem:[#allocation37_spill]] }
  0x16   : > { %p6997_p9 = pneg %p7520_p8  ;;  %s205_s6 = sshll.u32 %s7430_s30, 4  ;;  %s7535_s6 = int_to_ptr.vmem [resolvable:$true] %s205_s6 }
  0x18   : > { %p7531_p11 = pnand %p6997_p9, %p8913_p1 }
  0x1a   : > { %p7203_p13 = pneg %p7531_p11 }
  0x1b   : > { %s7201_s9 = scalar_lea.hbm %s8937_s2, 512 }
  0x1c   : > { %p7202_p12 = scmp.ne.s32.totalorder %s8937_s2, %s7201_s9  ;;  %p7208_p5 = scmp.lt.u32.totalorder %s7201_s9, %s8937_s2 }
  0x1e   : > { %p7204_p0 = pnand %p7203_p13, %p7202_p12 }
  0x20   : > { %p7205_p3 = pneg %p7204_p0 }
  0x22   : > { %p7210_p7 = pnand %p7208_p5, %p7205_p3 }
  0x24   : > { %7213 = shalt.err (!%p7210_p7)
}
  0x25   : > { %s7214_s14 = scalar_lea.vmem %s7524_s28, 512  ;;  %p7222_p2 = scmp.lt.s32.totalorder %s7524_s28, %s7524_s28 }
  0x26   : > { %p7215_p9 = scmp.ne.s32.totalorder %s7524_s28, %s7214_s14  ;;  %p7223_p12 = scmp.lt.s32.totalorder %s7214_s14, %s7214_s14 }
  0x28   : > { %p7217_p10 = pnand %p7215_p9, %p7203_p13  ;;  %p7224_p0 = por %p7223_p12, %p7222_p2 }
  0x2a   : > { %p7218_p1 = pneg %p7217_p10 }
  0x2c   : > { %p7225_p6 = pnand %p7224_p0, %p7218_p1 }
  0x2e   : > { %7228 = shalt.err (!%p7225_p6)
}
  0x2f   : > { %s8914_s15 = smov 128   ;;  %s8916_s16 = smov 8  }
  0x30   : > { %7000 = dma.hbm_to_vmem [thread:$0]  (!%p7531_p11), %s8937_s2, 512, %s7524_s28, [#allocation6], %s8914_s15, %s8914_s15, %s8916_s16  }
  0x31   : > { %s7229_s7 = scalar_lea.hbm %s8910_s3, 256 }
  0x32   : > { %p7230_p1 = scmp.ne.s32.totalorder %s8910_s3, %s7229_s7  ;;  %p7236_p10 = scmp.lt.u32.totalorder %s7229_s7, %s8910_s3 }
  0x34   : > { %p7232_p2 = pnand %p7230_p1, %p7203_p13 }
  0x36   : > { %p7233_p6 = pneg %p7232_p2 }
  0x38   : > { %p7238_p3 = pnand %p7236_p10, %p7233_p6 }
  0x3a   : > { %7241 = shalt.err (!%p7238_p3)
}
  0x3b   : > { %s7242_s28 = scalar_lea.vmem %s7535_s6, 256  ;;  %p7250_p12 = scmp.lt.s32.totalorder %s7535_s6, %s7535_s6 }
  0x3c   : > { %p7243_p5 = scmp.ne.s32.totalorder %s7535_s6, %s7242_s28  ;;  %p7251_p0 = scmp.lt.s32.totalorder %s7242_s28, %s7242_s28 }
  0x3e   : > { %p7245_p7 = pnand %p7243_p5, %p7203_p13  ;;  %p7252_p1 = por %p7251_p0, %p7250_p12 }
  0x40   : > { %p7246_p9 = pneg %p7245_p7 }
  0x42   : > { %p7253_p2 = pnand %p7252_p1, %p7246_p9 }
  0x44   : > { %7256 = shalt.err (!%p7253_p2)
}
  0x45   : > { %7003 = dma.hbm_to_vmem [thread:$0]  (!%p7531_p11), %s8910_s3, 256, %s7535_s6, [#allocation9], %s8914_s15, %s8914_s15, %s8916_s16  }
  0x46   : > { %s7596_s29 = sadd.s32 1, %s7427_s21   ;;  %s36_s14 = sadd.s32 1, %s7423_s20 }
  0x47   : > { %s33_s17 = ssub.s32 %s7427_s21, %s7596_s29  ;;  %p43_p13 = scmp.ne.s32.totalorder %s7423_s20, %s7419_s19 }
  0x48   : > { %p34_p6 = scmp.eq.s32.totalorder %s33_s17, 0  ;;  %p44_p10 = scmp.eq.s32.totalorder %s7427_s21, 0 }
  0x49   : > { %p8938_p3 = scmp.eq.s32.totalorder %s7501_s22, 1  ;;  %p7020_p7 = scmp.lt.s32.totalorder %s7427_s21, 2 }
  0x4a   : > { %s7612_s27 = scalar_select %p34_p6, %s7423_s20, %s36_s14  }
  0x4b   : > { %p7606_p5 = por %p8938_p3, %p43_p13  ;;  %p45_p9 = por %p44_p10, %p43_p13 }
  0x4c   : > { %s219_s30 = sand.u32 1, %s7423_s20   ;;  %s6459_s6 = sshll.u32 %s7427_s21, 10 }
  0x4d   : > { %s8939_s23 = scalar_select %p7606_p5, 1, 0 }
  0x4e   : > { %s6326_s7 = sshll.u32 %s219_s30, 6  ;;  %s8940_s0 = sld [smem:[#allocation36_spill]] }
  0x4f   : > { %s223_s11 = scalar_lea.vmem [#allocation2], %s6326_s7  ;;  %p7623_p11 = pnand %p7020_p7, %p45_p9 }
  0x50   : > { %s230_s28 = sshll.u32 %s223_s11, 4  ;;  %s7630_s17 = scalar_lea.hbm %s8908_s1, %s6459_s6  ;;  %s7621_s28 = int_to_ptr.vmem [resolvable:$true] %s230_s28 }
  0x51   : > { %s244_s8 = scalar_lea.vmem [#allocation5], %s6326_s7  ;;  %s7634_s15 = scalar_lea.sflag [#allocation3], %s219_s30 }
  0x52   : > { %s7632_s9 = sshll.u32 %s244_s8, 4  ;;  %p7259_p0 = pneg %p7623_p11  ;;  %s7666_s9 = int_to_ptr.vmem [resolvable:$true] %s7632_s9 }
  0x54   : > { %s7619_s10 = scalar_lea.hbm %s8940_s0, %s6459_s6  ;;  %s7262_s13 = scalar_lea.hbm %s8940_s0, 2048 }
  0x55   : > { %s7257_s11 = scalar_lea.hbm %s7619_s10, 1024  ;;  %p7263_p13 = scmp.lt.u32.totalorder %s7619_s10, %s8940_s0 }
  0x56   : > { %p7258_p12 = scmp.ne.s32.totalorder %s7619_s10, %s7257_s11  ;;  %p7264_p6 = scmp.lt.u32.totalorder %s7262_s13, %s7257_s11 }
  0x57   : > { %p7266_p3 = scmp.lt.u32.totalorder %s7257_s11, %s7619_s10 }
  0x58   : > { %p7260_p1 = pnand %p7259_p0, %p7258_p12  ;;  %p7265_p10 = por %p7264_p6, %p7263_p13 }
  0x5a   : > { %p7261_p2 = pneg %p7260_p1  ;;  %p7267_p7 = por %p7266_p3, %p7265_p10 }
  0x5c   : > { %p7268_p9 = pnand %p7267_p7, %p7261_p2 }
  0x5e   : > { %7271 = shalt.err (!%p7268_p9)
}
  0x5f   : > { %s7272_s30 = scalar_lea.vmem %s7621_s28, 1024  ;;  %s7433_s2 = smov [#allocation2]  }
  0x60   : > { %p7273_p12 = scmp.ne.s32.totalorder %s7621_s28, %s7272_s30  ;;  %s7277_s16 = sshll.u32 %s7433_s2, 4  ;;  %s7278_s16 = int_to_ptr.vmem [resolvable:$false] %s7277_s16 }
  0x61   : > { %s7279_s7 = scalar_lea.vmem %s7278_s16, 2048  ;;  %p7280_p4 = scmp.lt.s32.totalorder %s7621_s28, %s7278_s16 }
  0x62   : > { %p7275_p1 = pnand %p7273_p12, %p7259_p0  ;;  %p7281_p13 = scmp.lt.s32.totalorder %s7279_s7, %s7272_s30 }
  0x64   : > { %p7276_p5 = pneg %p7275_p1  ;;  %p7282_p6 = por %p7281_p13, %p7280_p4 }
  0x66   : > { %p7283_p10 = pnand %p7282_p6, %p7276_p5 }
  0x68   : > { %7286 = shalt.err (!%p7283_p10)
}
  0x69   : > { %s8942_s8 = smov 8   ;;  %s8943_s11 = smov 128  }
  0x6a   : > { %7007 = dma.hbm_to_vmem [thread:$0]  (!%p7623_p11), %s7619_s10, 1024, %s7621_s28, %s7634_s15, %s8943_s11, %s8943_s11, %s8942_s8  }
  0x6b   : > { %s240_s13 = sand.u32 1, %s7427_s21   ;;  %s7287_s6 = scalar_lea.hbm %s7630_s17, 1024 }
  0x6c   : > { %s7669_s14 = scalar_lea.sflag [#allocation6], %s240_s13  ;;  %p7288_p4 = scmp.ne.s32.totalorder %s7630_s17, %s7287_s6 }
  0x6d   : > { %s7292_s16 = scalar_lea.hbm %s8908_s1, 2048  ;;  %p7293_p3 = scmp.lt.u32.totalorder %s7630_s17, %s8908_s1 }
  0x6e   : > { %p7290_p5 = pnand %p7288_p4, %p7259_p0  ;;  %p7294_p7 = scmp.lt.u32.totalorder %s7292_s16, %s7287_s6 }
  0x6f   : > { %p7296_p12 = scmp.lt.u32.totalorder %s7287_s6, %s7630_s17 }
  0x70   : > { %p7291_p2 = pneg %p7290_p5  ;;  %p7295_p9 = por %p7294_p7, %p7293_p3 }
  0x72   : > { %p7297_p1 = por %p7296_p12, %p7295_p9 }
  0x74   : > { %p7298_p13 = pnand %p7297_p1, %p7291_p2 }
  0x76   : > { %7301 = shalt.err (!%p7298_p13)
}
  0x77   : > { %s7302_s15 = scalar_lea.vmem %s7666_s9, 1024  ;;  %s7434_s10 = smov [#allocation5]  }
  0x78   : > { %p7303_p6 = scmp.ne.s32.totalorder %s7666_s9, %s7302_s15  ;;  %s7307_s28 = sshll.u32 %s7434_s10, 4  ;;  %s7308_s28 = int_to_ptr.vmem [resolvable:$false] %s7307_s28 }
  0x79   : > { %s7309_s0 = scalar_lea.vmem %s7308_s28, 2048  ;;  %p7310_p5 = scmp.lt.s32.totalorder %s7666_s9, %s7308_s28 }
  0x7a   : > { %p7305_p10 = pnand %p7303_p6, %p7259_p0  ;;  %p7311_p3 = scmp.lt.s32.totalorder %s7309_s0, %s7302_s15 }
  0x7c   : > { %p7306_p4 = pneg %p7305_p10  ;;  %p7312_p7 = por %p7311_p3, %p7310_p5 }
  0x7e   : > { %p7313_p9 = pnand %p7312_p7, %p7306_p4 }
  0x80   : > { %7316 = shalt.err (!%p7313_p9)
}
  0x81   : > { %7010 = dma.hbm_to_vmem [thread:$0]  (!%p7623_p11), %s7630_s17, 1024, %s7666_s9, %s7669_s14, %s8943_s11, %s8943_s11, %s8942_s8  }
  0x82   : > { %263 = sbr.rel (%p7520_p8) target bundleno = 2986 (0xbaa), region = 36 }
  0x89   : > { %s7701_s13 = sand.u32 1, %s7419_s19   ;;  %p8944_p0 = scmp.ne.s32.totalorder %s8933_s24, 0 }
  0x8a   : > { %s7704_s6 = sshll.u32 %s7701_s13, 6  ;;  %s266_s12 = scalar_lea.sflag [#allocation3], %s7701_s13 }
  0x8b   : > { %s7708_s30 = scalar_lea.vmem [#allocation2], %s7704_s6 }
  0x8c   : > { %7390 = dma.done.wait (%p8944_p0), %s266_s12, 1024  }
  0x8d   : > { %7392 = vsyncadd (%p8944_p0), %s266_s12, 4294966272  ;;  %s274_s26 = sand.u32 1, %s7501_s22   ;;  %s7716_s9 = scalar_lea.vmem [#allocation5], %s7704_s6 }
  0x8e   : > { %s275_s17 = scalar_lea.sflag [#allocation6], %s274_s26 }
  0x8f   : > { %7394 = dma.done.wait (%p8944_p0), %s275_s17, 1024  }
  0x90   : > { %7396 = vsyncadd (%p8944_p0), %s275_s17, 4294966272  ;;  %p8945_p8 = scmp.eq.s32.totalorder %s7501_s22, 0 }
  0x92   : > { %7398 = dma.done.wait (%p8945_p8), [#allocation6], 512   ;;  %p8946_p11 = pmov %p8945_p8 }
  0x93   : > { %p8947_p2 = pmov %p8945_p8 }
  0x94   : > { %7400 = vsyncadd (%p8946_p11), [#allocation6], 4294966784 }
  0x95   : > { %7402 = dma.done.wait (%p8947_p2), [#allocation9], 256   ;;  %p8948_p12 = pmov %p8947_p2 }
  0x96   : > { %vm479_vm0 = vcmask 130048   ;;  %v343_v0 = vld [vmem:[#allocation7] sm:$0xff]  ;;  %v344_v1 = vld [vmem:[#allocation7 + $0x8] sm:$0xff]  ;;  %vm347_vm1 = vcmask 261120   ;;  %v345_v6 = vld [vmem:[#allocation7 + $0x10] sm:$0xff]  ;;  %v8920_v25 = vmov 0.0  }
  0x97   : > { %7404 = vsyncadd (%p8948_p12), [#allocation9], 4294967040  ;;  %v477_v2 = vld [vmem:[#allocation8] sm:$0xff]  ;;  %v6969_v3 = vpack.c.bf16 %v344_v1, %v343_v0  ;;  %v478_v4 = vld [vmem:[#allocation8 + $0x8] sm:$0xff]  ;;  %vm7436_vm2 = vmmov 0   ;;  %vm609_vm3 = vcmask 64512  }
  0x98   : > { %v335_v5 = vld [vmem:[%s7716_s9] sm:$0xff]  ;;  %v6977_v7 = vpack.c.bf16 %v478_v4, %v477_v2  ;;  %v346_v8 = vld [vmem:[#allocation7 + $0x18] sm:$0xff]  ;;  %v336_v11 = vld [vmem:[%s7716_s9 + $0x8] sm:$0xff]  ;;  %s7437_s24 = smov 96   ;;  %s7438_s8 = smov 120   ;;  %vm6018_vm4 = vcmask 195584  }
  0x99   : > { %6637 = vmatprep.mubr.msk.f32.mxu1 %vm479_vm0, %v335_v5  ;;  %v327_v9 = vld [vmem:[%s7708_s30] sm:$0xff]  ;;  %6970 = vmatprep.subr.bf16.mxu0 %v6969_v3  ;;  %v6973_v10 = vpack.c.bf16 %v346_v8, %v345_v6  ;;  %v337_v12 = vld [vmem:[%s7716_s9 + $0x10] sm:$0xff]  ;;  %v328_v13 = vld [vmem:[%s7708_s30 + $0x8] sm:$0xff]  ;;  %s7439_s11 = smov 88   ;;  %s7440_s14 = smov 112  }
  0x9a   : > { %6621 = vmatprep.mubr.msk.f32.mxu0 %vm347_vm1, %v327_v9  ;;  %6978 = vmatprep.subr.bf16.mxu1 %v6977_v7  ;;  %v338_v14 = vld [vmem:[%s7716_s9 + $0x18] sm:$0xff]  ;;  %v329_v15 = vld [vmem:[%s7708_s30 + $0x10] sm:$0xff]  ;;  %v339_v16 = vld [vmem:[%s7716_s9 + $0x20] sm:$0xff]  ;;  %s7441_s2 = smov 80   ;;  %s7442_s16 = smov 104  }
  0x9b   : > { %6972 = vmatpush3.bf16.msra.mxu0 %v6969_v3  ;;  %6980 = vmatpush3.bf16.msra.mxu1 %v6977_v7  ;;  %v330_v17 = vld [vmem:[%s7708_s30 + $0x18] sm:$0xff]  ;;  %v340_v18 = vld [vmem:[%s7716_s9 + $0x28] sm:$0xff]  ;;  %v331_v19 = vld [vmem:[%s7708_s30 + $0x20] sm:$0xff]  ;;  %s7443_s7 = smov 72   ;;  %s7444_s15 = smov 8  }
  0x9c   : > { %6974 = vmatprep.subr.bf16.mxu0 %v6973_v10  ;;  %v341_v20 = vld [vmem:[%s7716_s9 + $0x30] sm:$0xff]  ;;  %v332_v21 = vld [vmem:[%s7708_s30 + $0x28] sm:$0xff]  ;;  %v342_v22 = vld [vmem:[%s7716_s9 + $0x38] sm:$0xff]  ;;  %6649 = vmatprep.subr.mxu1 %v8920_v25  ;;  %s7445_s10 = smov 16   ;;  %s7446_s28 = smov 24  }
  0x9d   : > { %v333_v23 = vld [vmem:[%s7708_s30 + $0x30] sm:$0xff]  ;;  %v334_v24 = vld [vmem:[%s7708_s30 + $0x38] sm:$0xff]  ;;  %s8736_s0 = scalar_lea.vmem [#allocation11], %s7704_s6  ;;  %s315_s12 = scalar_lea.vmem [#allocation10], %s7704_s6 }
  0x9e   : > { %6638 = vmatmul.mubr.msk.f32.vlgmr.msra.gmra.mrb[0].mxu1 %vm479_vm0, %v336_v11  ;;  %s6158_s6 = sshll.u32 %s315_s12, 4  ;;  %s6461_s30 = sshll.u32 %s7501_s22, 10  ;;  %s8805_s6 = int_to_ptr.vmem [resolvable:$true] %s6158_s6 }
  0x9f   : > { %6976 = vmatpush3.bf16.msra.mxu0 %v6973_v10  ;;  %6640 = vmatprep.mubr.msk.f32.mxu1 %vm479_vm0, %v337_v12  ;;  %s6174_s26 = sshll.u32 %s8736_s0, 4  ;;  %p8984_p13 = scmp.ne.s32.totalorder %s8939_s23, 0  ;;  %s8817_s26 = int_to_ptr.vmem [resolvable:$true] %s6174_s26 }
  0xa0   : > { %6654 = vmatprep.subr.mxu0 %v8920_v25 }
  0xa2   : > { %6622 = vmatmul.mubr.msk.f32.vlgmr.msra.gmra.mrb[0].mxu0 %vm347_vm1, %v328_v13  ;;  %6641 = vmatmul.mubr.msk.f32.gmra.mrb[2].mxu1 %vm479_vm0, %v338_v14 }
  0xa3   : > { %6624 = vmatprep.mubr.msk.f32.mxu0 %vm347_vm1, %v329_v15  ;;  %6643 = vmatprep.mubr.msk.f32.mxu1 %vm479_vm0, %v339_v16 }
  0xa6   : > { %6625 = vmatmul.mubr.msk.f32.gmra.mrb[2].mxu0 %vm347_vm1, %v330_v17  ;;  %6644 = vmatmul.mubr.msk.f32.gmra.mrb[4].mxu1 %vm479_vm0, %v340_v18 }
  0xa7   : > { %6627 = vmatprep.mubr.msk.f32.mxu0 %vm347_vm1, %v331_v19  ;;  %6646 = vmatprep.mubr.msk.f32.mxu1 %vm479_vm0, %v341_v20 }
  0xaa   : > { %6628 = vmatmul.mubr.msk.f32.gmra.mrb[4].mxu0 %vm347_vm1, %v332_v21  ;;  %6647 = vmatmul.mubr.msk.f32.gmra.mrb[6].mxu1 %vm479_vm0, %v342_v22 }
  0xab   : > { %6630 = vmatprep.mubr.msk.f32.mxu0 %vm347_vm1, %v333_v23  ;;  %6651 = vmatprep.mubr.msk.f32.mxu1 %vm7436_vm2, %v8920_v25 }
  0xae   : > { %6631 = vmatmul.mubr.msk.f32.gmra.mrb[6].mxu0 %vm347_vm1, %v334_v24 }
  0xaf   : > { %6656 = vmatprep.mubr.msk.f32.mxu0 %vm7436_vm2, %v8920_v25 }
 0x171   : > { %v7768_v26 = vpop.f32.mrb[0].mxu1 }
 0x172   : > { %v7770_v27 = vpop.f32.mrb[1].mxu1  ;;  %6655 = vmatpush3.xpose.msk.msra.mxu0 %vm609_vm3, %v7768_v26 }
 0x173   : > { %6650 = vmatpush3.xpose.msk.msra.mxu1 %vm609_vm3, %v7770_v27  ;;  %6664 = vmatprep.subr.mxu0 %v8920_v25 }
 0x174   : > { %6659 = vmatprep.subr.mxu1 %v8920_v25 }
 0x175   : > { %v7777_v28 = vpop.f32.mrb[0].mxu0  ;;  %v7782_v30 = vpop.f32.mrb[2].mxu1 }
 0x176   : > { %v7780_v29 = vpop.f32.mrb[1].mxu0  ;;  %6657 = vmatmul.mubr.msk.f32.vlgmr.msra.gmra.mrb[8].mxu0 %vm609_vm3, %v7777_v28  ;;  %v7786_v31 = vpop.f32.mrb[3].mxu1 }
 0x177   : > { %6652 = vmatmul.mubr.msk.f32.vlgmr.msra.gmra.mrb[8].mxu1 %vm609_vm3, %v7780_v29  ;;  %6665 = vmatpush3.xpose.msk.msra.mxu0 %vm609_vm3, %v7782_v30 }
 0x178   : > { %6660 = vmatpush3.xpose.msk.msra.mxu1 %vm609_vm3, %v7786_v31  ;;  %6666 = vmatprep.mubr.msk.f32.mxu0 %vm7436_vm2, %v8920_v25 }
 0x179   : > { %v7796_v32 = vpop.f32.mrb[2].mxu0  ;;  %6661 = vmatprep.mubr.msk.f32.mxu1 %vm7436_vm2, %v8920_v25  ;;  %6669 = vmatprep.subr.mxu1 %v8920_v25  ;;  %v7803_v34 = vpop.f32.mrb[4].mxu1 }
 0x17a   : > { %v7801_v33 = vpop.f32.mrb[3].mxu0  ;;  %6667 = vmatmul.mubr.msk.f32.vlgmr.msra.gmra.mrb[10].mxu0 %vm609_vm3, %v7796_v32  ;;  %6674 = vmatprep.subr.mxu0 %v8920_v25  ;;  %v7808_v35 = vpop.f32.mrb[5].mxu1 }
 0x17b   : > { %6662 = vmatmul.mubr.msk.f32.vlgmr.msra.gmra.mrb[10].mxu1 %vm609_vm3, %v7801_v33  ;;  %6675 = vmatpush3.xpose.msk.msra.mxu0 %vm609_vm3, %v7803_v34 }
 0x17c   : > { %6670 = vmatpush3.xpose.msk.msra.mxu1 %vm609_vm3, %v7808_v35  ;;  %6671 = vmatprep.mubr.msk.f32.mxu1 %vm7436_vm2, %v8920_v25 }
 0x17d   : > { %v7818_v36 = vpop.f32.mrb[4].mxu0  ;;  %6679 = vmatprep.subr.mxu1 %v8920_v25  ;;  %6676 = vmatprep.mubr.msk.f32.mxu0 %vm7436_vm2, %v8920_v25  ;;  %v7825_v38 = vpop.f32.mrb[6].mxu1 }
 0x17e   : > { %v7823_v37 = vpop.f32.mrb[5].mxu0  ;;  %6677 = vmatmul.mubr.msk.f32.vlgmr.msra.gmra.mrb[12].mxu0 %vm609_vm3, %v7818_v36  ;;  %6684 = vmatprep.subr.mxu0 %v8920_v25  ;;  %v7830_v39 = vpop.f32.mrb[7].mxu1 }
 0x17f   : > { %6672 = vmatmul.mubr.msk.f32.vlgmr.msra.gmra.mrb[12].mxu1 %vm609_vm3, %v7823_v37  ;;  %6685 = vmatpush3.xpose.msk.msra.mxu0 %vm609_vm3, %v7825_v38 }
 0x180   : > { %6680 = vmatpush3.xpose.msk.msra.mxu1 %vm609_vm3, %v7830_v39  ;;  %6681 = vmatprep.mubr.msk.f32.mxu1 %vm7436_vm2, %v8920_v25 }
 0x181   : > { %v7840_v40 = vpop.f32.mrb[6].mxu0  ;;  %6686 = vmatprep.mubr.msk.f32.mxu0 %vm7436_vm2, %v8920_v25  ;;  %6689 = vmatprep.subr.mxu1 %v8920_v25 }
 0x182   : > { %v7845_v41 = vpop.f32.mrb[7].mxu0  ;;  %6687 = vmatmul.mubr.msk.f32.vlgmr.msra.gmra.mrb[14].mxu0 %vm609_vm3, %v7840_v40  ;;  %6694 = vmatprep.subr.mxu0 %v8920_v25 }
 0x183   : > { %6682 = vmatmul.mubr.msk.f32.vlgmr.msra.gmra.mrb[14].mxu1 %vm609_vm3, %v7845_v41  ;;  %6696 = vmatprep.mubr.msk.f32.mxu0 %vm7436_vm2, %v8920_v25 }
 0x184   : > { %6691 = vmatprep.mubr.msk.f32.mxu1 %vm7436_vm2, %v8920_v25 }
 0x249   : > { %v758_v42 = vpop.f32.mrb[8].mxu0 }
 0x24a   : > { %v682_v43 = vpop.f32.mrb[8].mxu1  ;;  %v6658_v44 = vpop.f32.mrb[9].mxu0  ;;  %v1219_v47 = vmul.f32 0.25, %v758_v42 }
 0x24b   : > { %v1218_v45 = vmul.f32 0.25, %v682_v43  ;;  %v6653_v46 = vpop.f32.mrb[9].mxu1 }
 0x24c   : > { %v1229_v56 = vsel %vm609_vm3, %v1219_v47, -inf }
 0x24d   : > { %v910_v48 = vpop.f32.mrb[10].mxu0  ;;  %v1226_v49 = vsel %vm609_vm3, %v1218_v45, -inf }
 0x24e   : > { %v1221_v50 = vmul.f32 0.25, %v910_v48  ;;  %1227 = vmax.xlane.f32.xlu0 %v1226_v49  ;;  %v834_v51 = vpop.f32.mrb[10].mxu1  ;;  %v6668_v52 = vpop.f32.mrb[11].mxu0 }
 0x24f   : > { %v6663_v53 = vpop.f32.mrb[11].mxu1  ;;  %v1220_v54 = vmul.f32 0.25, %v834_v51 }
 0x250   : > { %v1235_v55 = vsel %vm609_vm3, %v1221_v50, -inf }
 0x251   : > { %1236 = vmax.xlane.f32.xlu1 %v1235_v55  ;;  %v1062_v57 = vpop.f32.mrb[12].mxu0  ;;  %v1232_v63 = vsel %vm609_vm3, %v1220_v54, -inf }
 0x252   : > { %v986_v58 = vpop.f32.mrb[12].mxu1  ;;  %1230 = vmax.xlane.f32.xlu0 %v1229_v56  ;;  %v1223_v59 = vmul.f32 0.25, %v1062_v57  ;;  %v6678_v60 = vpop.f32.mrb[13].mxu0 }
 0x253   : > { %v1222_v61 = vmul.f32 0.25, %v986_v58  ;;  %v6673_v62 = vpop.f32.mrb[13].mxu1 }
 0x254   : > { %v1241_v3 = vsel %vm609_vm3, %v1223_v59, -inf }
 0x255   : > { %1233 = vmax.xlane.f32.xlu1 %v1232_v63  ;;  %v1238_v0 = vsel %vm609_vm3, %v1222_v61, -inf  ;;  %v1214_v1 = vpop.f32.mrb[14].mxu0 }
 0x256   : > { %v1138_v2 = vpop.f32.mrb[14].mxu1  ;;  %1239 = vmax.xlane.f32.xlu0 %v1238_v0  ;;  %v1225_v4 = vmul.f32 0.25, %v1214_v1  ;;  %v6688_v5 = vpop.f32.mrb[15].mxu0 }
 0x257   : > { %v1224_v6 = vmul.f32 0.25, %v1138_v2  ;;  %v6683_v7 = vpop.f32.mrb[15].mxu1 }
 0x258   : > { %v1247_v9 = vsel %vm609_vm3, %v1225_v4, -inf }
 0x259   : > { %1242 = vmax.xlane.f32.xlu1 %v1241_v3  ;;  %v1244_v8 = vsel %vm609_vm3, %v1224_v6, -inf }
 0x25a   : > { %1245 = vmax.xlane.f32.xlu0 %v1244_v8 }
 0x25d   : > { %1248 = vmax.xlane.f32.xlu1 %v1247_v9 }
 0x26e   : > { %1390 = vrot.lane.b32.xlu1 %v7768_v26, %s7437_s24 }
 0x270   : > { %1314 = vrot.lane.b32.xlu0 %v7770_v27, %s7437_s24 }
 0x272   : > { %1466 = vrot.lane.b32.xlu1 %v7786_v31, %s7437_s24 }
 0x274   : > { %1618 = vrot.lane.b32.xlu0 %v7808_v35, %s7437_s24 }
 0x276   : > { %1542 = vrot.lane.b32.xlu1 %v7782_v30, %s7437_s24 }
 0x278   : > { %1770 = vrot.lane.b32.xlu0 %v7830_v39, %s7437_s24 }
 0x27a   : > { %1694 = vrot.lane.b32.xlu1 %v7803_v34, %s7437_s24 }
 0x27c   : > { %1924 = vrot.lane.b32.xlu0 %v7770_v27, %s7438_s8 }
 0x27e   : > { %1846 = vrot.lane.b32.xlu1 %v7825_v38, %s7437_s24  ;;  %s8813_s24 = scalar_lea.hbm %s8911_s4, %s6461_s30 }
 0x280   : > { %1922 = vrot.lane.b32.xlu0 %v7780_v29, %s7438_s8 }
 0x282   : > { %2002 = vrot.lane.b32.xlu1 %v7768_v26, %s7438_s8 }
 0x284   : > { %2080 = vrot.lane.b32.xlu0 %v7786_v31, %s7438_s8 }
 0x286   : > { %2000 = vrot.lane.b32.xlu1 %v7777_v28, %s7438_s8 }
 0x28a   : > { %2158 = vrot.lane.b32.xlu1 %v7782_v30, %s7438_s8 }
 0x2db   : > { %v1228_v10 = vpop.xlane.xlu0 %1227 }
 0x2dc   : > { %v1250_v11 = vsub.f32 %v1218_v45, %v1228_v10 }
 0x2de   : > { %v1258_v12 = vmul.f32 1.442695, %v1250_v11  ;;  %v1237_v13 = vpop.xlane.xlu1 %1236 }
 0x2df   : > { %v1253_v14 = vsub.f32 %v1221_v50, %v1237_v13  ;;  %v1231_v15 = vpop.xlane.xlu0 %1230 }
 0x2e0   : > { %7073 = vpow2.f32 %v1258_v12  ;;  %v1251_v16 = vsub.f32 %v1219_v47, %v1231_v15 }
 0x2e1   : > { %v1264_v17 = vmul.f32 1.442695, %v1253_v14 }
 0x2e2   : > { %v1260_v18 = vmul.f32 1.442695, %v1251_v16  ;;  %v1234_v19 = vpop.xlane.xlu1 %1233 }
 0x2e3   : > { %v1252_v20 = vsub.f32 %v1220_v54, %v1234_v19  ;;  %v1240_v21 = vpop.xlane.xlu0 %1239 }
 0x2e4   : > { %7075 = vpow2.f32 %v1260_v18  ;;  %v1254_v22 = vsub.f32 %v1222_v61, %v1240_v21 }
 0x2e5   : > { %v1262_v23 = vmul.f32 1.442695, %v1252_v20  ;;  %7077 = vpow2.f32 %v1264_v17 }
 0x2e6   : > { %v1266_v24 = vmul.f32 1.442695, %v1254_v22  ;;  %v1243_v42 = vpop.xlane.xlu1 %1242 }
 0x2e7   : > { %7079 = vpow2.f32 %v1262_v23  ;;  %v1255_v43 = vsub.f32 %v1223_v59, %v1243_v42  ;;  %v1246_v44 = vpop.xlane.xlu0 %1245 }
 0x2e8   : > { %v1256_v45 = vsub.f32 %v1224_v6, %v1246_v44  ;;  %7081 = vpow2.f32 %v1266_v24 }
 0x2e9   : > { %v1268_v46 = vmul.f32 1.442695, %v1255_v43 }
 0x2ea   : > { %v7884_v48 = vpop.eup %7073  ;;  %v1270_v47 = vmul.f32 1.442695, %v1256_v45  ;;  %v1249_v49 = vpop.xlane.xlu1 %1248 }
 0x2eb   : > { %7083 = vpow2.f32 %v1268_v46  ;;  %v1257_v50 = vsub.f32 %v1225_v4, %v1249_v49  ;;  %v1315_v51 = vpop.permute.xlu0 %1314  ;;  %v1274_v52 = vsel %vm609_vm3, %v7884_v48, 0.0 }
 0x2ec   : > { %1275 = vadd.xlane.f32.xlu0 %v1274_v52  ;;  %6690 = vmatpush3.msra.mxu1 %v1315_v51  ;;  %7085 = vpow2.f32 %v1270_v47 }
 0x2ed   : > { %v1272_v53 = vmul.f32 1.442695, %v1257_v50  ;;  %6699 = vmatprep.subr.mxu1 %v8920_v25 }
 0x2ee   : > { %v7889_v54 = vpop.eup %7075  ;;  %v1391_v55 = vpop.permute.xlu1 %1390 }
 0x2ef   : > { %7087 = vpow2.f32 %v1272_v53  ;;  %6695 = vmatpush3.msra.mxu0 %v1391_v55  ;;  %v1277_v56 = vsel %vm609_vm3, %v7889_v54, 0.0  ;;  %v7893_v57 = vpop.eup %7077  ;;  %v1619_v7 = vpop.permute.xlu0 %1618 }
 0x2f0   : > { %1278 = vadd.xlane.f32.xlu1 %v1277_v56  ;;  %6704 = vmatprep.subr.mxu0 %v8920_v25  ;;  %v1283_v61 = vsel %vm609_vm3, %v7893_v57, 0.0 }
 0x2f1   : > { %v7896_v58 = vpop.eup %7079 }
 0x2f2   : > { %v1280_v59 = vsel %vm609_vm3, %v7896_v58, 0.0  ;;  %v7900_v60 = vpop.eup %7081  ;;  %v1467_v5 = vpop.permute.xlu1 %1466 }
 0x2f3   : > { %1281 = vadd.xlane.f32.xlu0 %v1280_v59  ;;  %v1286_v63 = vsel %vm609_vm3, %v7900_v60, 0.0  ;;  %v1771_v9 = vpop.permute.xlu0 %1770 }
 0x2f4   : > { %1284 = vadd.xlane.f32.xlu1 %v1283_v61 }
 0x2f5   : > { %v7904_v62 = vpop.eup %7083 }
 0x2f6   : > { %v1289_v0 = vsel %vm609_vm3, %v7904_v62, 0.0  ;;  %v7910_v1 = vpop.eup %7085  ;;  %v1543_v6 = vpop.permute.xlu1 %1542 }
 0x2f7   : > { %1287 = vadd.xlane.f32.xlu0 %v1286_v63  ;;  %v1292_v3 = vsel %vm609_vm3, %v7910_v1, 0.0  ;;  %v7938_v11 = vpop.permute.xlu0 %1924 }
 0x2f8   : > { %1290 = vadd.xlane.f32.xlu1 %v1289_v0 }
 0x2f9   : > { %v7912_v2 = vpop.eup %7087 }
 0x2fa   : > { %v1295_v4 = vsel %vm609_vm3, %v7912_v2, 0.0  ;;  %v1695_v8 = vpop.permute.xlu1 %1694 }
 0x2fb   : > { %1293 = vadd.xlane.f32.xlu0 %v1292_v3  ;;  %v7942_v13 = vpop.permute.xlu0 %1922 }
 0x2fc   : > { %1296 = vadd.xlane.f32.xlu1 %v1295_v4 }
 0x2fe   : > { %v1847_v10 = vpop.permute.xlu1 %1846 }
 0x2ff   : > { %v7946_v15 = vpop.permute.xlu0 %2080 }
 0x302   : > { %v7940_v12 = vpop.permute.xlu1 %2002 }
 0x306   : > { %v7944_v14 = vpop.permute.xlu1 %2000 }
 0x30a   : > { %v7948_v16 = vpop.permute.xlu1 %2158 }
 0x30d   : > { %2156 = vrot.lane.b32.xlu1 %v7796_v32, %s7438_s8 }
 0x311   : > { %2078 = vrot.lane.b32.xlu0 %v7801_v33, %s7438_s8  ;;  %2314 = vrot.lane.b32.xlu1 %v7803_v34, %s7438_s8 }
 0x315   : > { %2236 = vrot.lane.b32.xlu0 %v7808_v35, %s7438_s8  ;;  %2312 = vrot.lane.b32.xlu1 %v7818_v36, %s7438_s8 }
 0x319   : > { %2234 = vrot.lane.b32.xlu0 %v7823_v37, %s7438_s8  ;;  %2470 = vrot.lane.b32.xlu1 %v7825_v38, %s7438_s8 }
 0x31d   : > { %2392 = vrot.lane.b32.xlu0 %v7830_v39, %s7438_s8  ;;  %2468 = vrot.lane.b32.xlu1 %v7840_v40, %s7438_s8 }
 0x321   : > { %2390 = vrot.lane.b32.xlu0 %v7845_v41, %s7438_s8  ;;  %s6140_s8 = scalar_lea.sflag [#allocation4], %s7701_s13 }
 0x379   : > { %v1276_v17 = vpop.xlane.xlu0 %1275 }
 0x37a   : > { %7089 = vrcp.f32 %v1276_v17 }
 0x37d   : > { %v1279_v18 = vpop.xlane.xlu1 %1278 }
 0x37e   : > { %7091 = vrcp.f32 %v1279_v18 }
 0x380   : > { %v1282_v19 = vpop.xlane.xlu0 %1281 }
 0x381   : > { %7093 = vrcp.f32 %v1282_v19  ;;  %v1285_v20 = vpop.xlane.xlu1 %1284 }
 0x382   : > { %7095 = vrcp.f32 %v1285_v20 }
 0x384   : > { %v7090_v21 = vpop.eup %7089  ;;  %v1288_v22 = vpop.xlane.xlu0 %1287 }
 0x385   : > { %7097 = vrcp.f32 %v1288_v22  ;;  %v1291_v23 = vpop.xlane.xlu1 %1290  ;;  %v7951_v24 = vmul.f32 %v7090_v21, %v7884_v48 }
 0x386   : > { %7099 = vrcp.f32 %v1291_v23 }
 0x387   : > { %8949 = vst [vmem:[#allocation19_spill] sm:$0xff] %v7951_v24  ;;  %6692 = vmatmul.mubr.msk.f32.vlgmr.msra.gmra.mrb[16].mxu1 %vm609_vm3, %v7951_v24 }
 0x388   : > { %v7092_v42 = vpop.eup %7091  ;;  %6700 = vmatpush3.msra.mxu1 %v1467_v5  ;;  %v1294_v43 = vpop.xlane.xlu0 %1293  ;;  %6701 = vmatprep.mubr.msk.f32.mxu1 %vm7436_vm2, %v8920_v25 }
 0x389   : > { %7101 = vrcp.f32 %v1294_v43  ;;  %v1297_v44 = vpop.xlane.xlu1 %1296  ;;  %v7958_v45 = vmul.f32 %v7092_v42, %v7889_v54  ;;  %6709 = vmatprep.subr.mxu1 %v8920_v25 }
 0x38a   : > { %7103 = vrcp.f32 %v1297_v44 }
 0x38b   : > { %8950 = vst [vmem:[#allocation20_spill] sm:$0xff] %v7958_v45  ;;  %v7094_v46 = vpop.eup %7093  ;;  %6697 = vmatmul.mubr.msk.f32.vlgmr.msra.gmra.mrb[16].mxu0 %vm609_vm3, %v7958_v45 }
 0x38c   : > { %v7096_v48 = vpop.eup %7095  ;;  %6705 = vmatpush3.msra.mxu0 %v1543_v6  ;;  %v7964_v47 = vmul.f32 %v7094_v46, %v7896_v58  ;;  %6706 = vmatprep.mubr.msk.f32.mxu0 %vm7436_vm2, %v8920_v25  ;;  %v2079_v52 = vpop.permute.xlu0 %2078 }
 0x38d   : > { %6714 = vmatprep.subr.mxu0 %v8920_v25  ;;  %v7970_v49 = vmul.f32 %v7096_v48, %v7893_v57  ;;  %v2157_v54 = vpop.permute.xlu1 %2156 }
 0x38e   : > { %8951 = vst [vmem:[#allocation21_spill] sm:$0xff] %v7964_v47  ;;  %6702 = vmatmul.mubr.msk.f32.vlgmr.msra.gmra.mrb[18].mxu1 %vm609_vm3, %v7964_v47 }
 0x38f   : > { %8952 = vst [vmem:[#allocation22_spill] sm:$0xff] %v7970_v49  ;;  %v7098_v50 = vpop.eup %7097  ;;  %6710 = vmatpush3.msra.mxu1 %v1619_v7  ;;  %6707 = vmatmul.mubr.msk.f32.vlgmr.msra.gmra.mrb[18].mxu0 %vm609_vm3, %v7970_v49 }
 0x390   : > { %v7100_v51 = vpop.eup %7099  ;;  %6715 = vmatpush3.msra.mxu0 %v1695_v8  ;;  %6711 = vmatprep.mubr.msk.f32.mxu1 %vm7436_vm2, %v8920_v25  ;;  %v7979_v53 = vmul.f32 %v7098_v50, %v7900_v60  ;;  %v2237_v60 = vpop.permute.xlu0 %2236 }
 0x391   : > { %6719 = vmatprep.subr.mxu1 %v8920_v25  ;;  %6716 = vmatprep.mubr.msk.f32.mxu0 %vm7436_vm2, %v8920_v25  ;;  %v7985_v55 = vmul.f32 %v7100_v51, %v7904_v62  ;;  %v2315_v61 = vpop.permute.xlu1 %2314 }
 0x392   : > { %8953 = vst [vmem:[#allocation23_spill] sm:$0xff] %v7979_v53  ;;  %6712 = vmatmul.mubr.msk.f32.vlgmr.msra.gmra.mrb[20].mxu1 %vm609_vm3, %v7979_v53  ;;  %6724 = vmatprep.subr.mxu0 %v8920_v25 }
 0x393   : > { %8954 = vst [vmem:[#allocation24_spill] sm:$0xff] %v7985_v55  ;;  %v7102_v56 = vpop.eup %7101  ;;  %6720 = vmatpush3.msra.mxu1 %v1771_v9  ;;  %6717 = vmatmul.mubr.msk.f32.vlgmr.msra.gmra.mrb[20].mxu0 %vm609_vm3, %v7985_v55 }
 0x394   : > { %v7104_v57 = vpop.eup %7103  ;;  %6725 = vmatpush3.msra.mxu0 %v1847_v10  ;;  %6721 = vmatprep.mubr.msk.f32.mxu1 %vm7436_vm2, %v8920_v25  ;;  %v7995_v58 = vmul.f32 %v7102_v56, %v7910_v1  ;;  %v2235_v62 = vpop.permute.xlu0 %2234 }
 0x395   : > { %6726 = vmatprep.mubr.msk.f32.mxu0 %vm7436_vm2, %v8920_v25  ;;  %v8000_v59 = vmul.f32 %v7104_v57, %v7912_v2  ;;  %6729 = vmatprep.subr.mxu1 %v8920_v25  ;;  %v2313_v63 = vpop.permute.xlu1 %2312 }
 0x396   : > { %8955 = vst [vmem:[#allocation25_spill] sm:$0xff] %v7995_v58  ;;  %6722 = vmatmul.mubr.msk.f32.vlgmr.msra.gmra.mrb[22].mxu1 %vm609_vm3, %v7995_v58  ;;  %6734 = vmatprep.subr.mxu0 %v8920_v25 }
 0x397   : > { %8956 = vst [vmem:[#allocation26_spill] sm:$0xff] %v8000_v59  ;;  %6727 = vmatmul.mubr.msk.f32.vlgmr.msra.gmra.mrb[22].mxu0 %vm609_vm3, %v8000_v59  ;;  %6731 = vmatprep.mubr.msk.f32.mxu1 %vm7436_vm2, %v8920_v25 }
 0x398   : > { %6736 = vmatprep.mubr.msk.f32.mxu0 %vm7436_vm2, %v8920_v25  ;;  %v2393_v0 = vpop.permute.xlu0 %2392 }
 0x399   : > { %v2471_v1 = vpop.permute.xlu1 %2470 }
 0x39a   : > { %6730 = vmatpush3.xpose.msk.msra.mxu1 %vm609_vm3, %v7938_v11 }
 0x39b   : > { %6735 = vmatpush3.xpose.msk.msra.mxu0 %vm609_vm3, %v7940_v12  ;;  %6739 = vmatprep.subr.mxu1 %v8920_v25 }
 0x39c   : > { %6744 = vmatprep.subr.mxu0 %v8920_v25  ;;  %v2391_v2 = vpop.permute.xlu0 %2390 }
 0x39d   : > { %6732 = vmatmul.mubr.msk.f32.vlgmr.msra.gmra.mrb[24].mxu1 %vm609_vm3, %v7942_v13  ;;  %v2469_v3 = vpop.permute.xlu1 %2468 }
 0x39e   : > { %6737 = vmatmul.mubr.msk.f32.vlgmr.msra.gmra.mrb[24].mxu0 %vm609_vm3, %v7944_v14  ;;  %6740 = vmatpush3.xpose.msk.msra.mxu1 %vm609_vm3, %v7946_v15 }
 0x39f   : > { %6745 = vmatpush3.xpose.msk.msra.mxu0 %vm609_vm3, %v7948_v16  ;;  %6741 = vmatprep.mubr.msk.f32.mxu1 %vm7436_vm2, %v8920_v25 }
 0x3a0   : > { %6746 = vmatprep.mubr.msk.f32.mxu0 %vm7436_vm2, %v8920_v25  ;;  %6749 = vmatprep.subr.mxu1 %v8920_v25 }
 0x3a1   : > { %6742 = vmatmul.mubr.msk.f32.vlgmr.msra.gmra.mrb[26].mxu1 %vm609_vm3, %v2079_v52  ;;  %6754 = vmatprep.subr.mxu0 %v8920_v25 }
 0x3a2   : > { %6747 = vmatmul.mubr.msk.f32.vlgmr.msra.gmra.mrb[26].mxu0 %vm609_vm3, %v2157_v54  ;;  %6750 = vmatpush3.xpose.msk.msra.mxu1 %vm609_vm3, %v2237_v60 }
 0x3a3   : > { %6755 = vmatpush3.xpose.msk.msra.mxu0 %vm609_vm3, %v2315_v61  ;;  %6751 = vmatprep.mubr.msk.f32.mxu1 %vm7436_vm2, %v8920_v25 }
 0x3a4   : > { %6756 = vmatprep.mubr.msk.f32.mxu0 %vm7436_vm2, %v8920_v25  ;;  %6759 = vmatprep.subr.mxu1 %v8920_v25 }
 0x3a5   : > { %6752 = vmatmul.mubr.msk.f32.vlgmr.msra.gmra.mrb[28].mxu1 %vm609_vm3, %v2235_v62  ;;  %6764 = vmatprep.subr.mxu0 %v8920_v25 }
 0x3a6   : > { %6757 = vmatmul.mubr.msk.f32.vlgmr.msra.gmra.mrb[28].mxu0 %vm609_vm3, %v2313_v63  ;;  %6760 = vmatpush3.xpose.msk.msra.mxu1 %vm609_vm3, %v2393_v0 }
 0x3a7   : > { %6765 = vmatpush3.xpose.msk.msra.mxu0 %vm609_vm3, %v2471_v1  ;;  %6761 = vmatprep.mubr.msk.f32.mxu1 %vm7436_vm2, %v8920_v25 }
 0x3a8   : > { %6766 = vmatprep.mubr.msk.f32.mxu0 %vm7436_vm2, %v8920_v25  ;;  %6774 = vmatprep.subr.mxu0 %v8920_v25 }
 0x3a9   : > { %6762 = vmatmul.mubr.msk.f32.vlgmr.msra.gmra.mrb[30].mxu1 %vm609_vm3, %v2391_v2  ;;  %6769 = vmatprep.subr.mxu1 %v8920_v25 }
 0x3aa   : > { %6767 = vmatmul.mubr.msk.f32.vlgmr.msra.gmra.mrb[30].mxu0 %vm609_vm3, %v2469_v3  ;;  %6771 = vmatprep.mubr.msk.f32.mxu1 %vm7436_vm2, %v8920_v25 }
 0x3ab   : > { %6776 = vmatprep.mubr.msk.f32.mxu0 %vm7436_vm2, %v8920_v25 }
 0x45a   : > { %v8058_v4 = vpop.f32.mrb[16].mxu1 }
 0x45b   : > { %8957 = vst [vmem:[#allocation27_spill] sm:$0xff] %v8058_v4  ;;  %v6693_v5 = vpop.f32.mrb[17].mxu1 }
 0x45e   : > { %v8060_v6 = vpop.f32.mrb[16].mxu0 }
 0x45f   : > { %8958 = vst [vmem:[#allocation28_spill] sm:$0xff] %v8060_v6  ;;  %v6698_v7 = vpop.f32.mrb[17].mxu0 }
 0x461   : > { %v8062_v8 = vpop.f32.mrb[18].mxu1 }
 0x462   : > { %8959 = vst [vmem:[#allocation29_spill] sm:$0xff] %v8062_v8  ;;  %v6703_v9 = vpop.f32.mrb[19].mxu1  ;;  %v8064_v10 = vpop.f32.mrb[18].mxu0 }
 0x463   : > { %8960 = vst [vmem:[#allocation30_spill] sm:$0xff] %v8064_v10  ;;  %v6708_v11 = vpop.f32.mrb[19].mxu0 }
 0x465   : > { %v8066_v12 = vpop.f32.mrb[20].mxu1 }
 0x466   : > { %8961 = vst [vmem:[#allocation31_spill] sm:$0xff] %v8066_v12  ;;  %v6713_v13 = vpop.f32.mrb[21].mxu1  ;;  %v8068_v14 = vpop.f32.mrb[20].mxu0 }
 0x467   : > { %8962 = vst [vmem:[#allocation32_spill] sm:$0xff] %v8068_v14  ;;  %v6718_v15 = vpop.f32.mrb[21].mxu0 }
 0x469   : > { %v8070_v16 = vpop.f32.mrb[22].mxu1 }
 0x46a   : > { %8963 = vst [vmem:[#allocation33_spill] sm:$0xff] %v8070_v16  ;;  %v6723_v17 = vpop.f32.mrb[23].mxu1  ;;  %v8072_v18 = vpop.f32.mrb[22].mxu0 }
 0x46b   : > { %8964 = vst [vmem:[#allocation34_spill] sm:$0xff] %v8072_v18  ;;  %v6728_v19 = vpop.f32.mrb[23].mxu0 }
 0x470   : > { %v1996_v20 = vpop.f32.mrb[24].mxu1 }
 0x471   : > { %v2546_v21 = vmul.f32 0.25, %v1996_v20  ;;  %v6733_v22 = vpop.f32.mrb[25].mxu1  ;;  %v2074_v23 = vpop.f32.mrb[24].mxu0 }
 0x472   : > { %v2547_v42 = vmul.f32 0.25, %v2074_v23  ;;  %v6738_v43 = vpop.f32.mrb[25].mxu0 }
 0x473   : > { %v2554_v44 = vsel %vm609_vm3, %v2546_v21, -inf }
 0x474   : > { %2555 = vmax.xlane.f32.xlu0 %v2554_v44  ;;  %v2152_v46 = vpop.f32.mrb[26].mxu1  ;;  %v2557_v48 = vsel %vm609_vm3, %v2547_v42, -inf }
 0x475   : > { %v6743_v50 = vpop.f32.mrb[27].mxu1  ;;  %2558 = vmax.xlane.f32.xlu1 %v2557_v48  ;;  %v2230_v51 = vpop.f32.mrb[26].mxu0  ;;  %v2548_v56 = vmul.f32 0.25, %v2152_v46 }
 0x476   : > { %v2549_v52 = vmul.f32 0.25, %v2230_v51  ;;  %v6748_v54 = vpop.f32.mrb[27].mxu0 }
 0x477   : > { %v2560_v3 = vsel %vm609_vm3, %v2548_v56, -inf }
 0x478   : > { %v2308_v57 = vpop.f32.mrb[28].mxu1  ;;  %v2563_v60 = vsel %vm609_vm3, %v2549_v52, -inf }
 0x479   : > { %v6753_v61 = vpop.f32.mrb[29].mxu1  ;;  %2564 = vmax.xlane.f32.xlu0 %v2563_v60  ;;  %v2386_v62 = vpop.f32.mrb[28].mxu0  ;;  %v2550_v1 = vmul.f32 0.25, %v2308_v57 }
 0x47a   : > { %v2551_v63 = vmul.f32 0.25, %v2386_v62  ;;  %v6758_v0 = vpop.f32.mrb[29].mxu0 }
 0x47b   : > { %v2566_v17 = vsel %vm609_vm3, %v2550_v1, -inf }
 0x47c   : > { %v2464_v2 = vpop.f32.mrb[30].mxu1  ;;  %v2569_v5 = vsel %vm609_vm3, %v2551_v63, -inf }
 0x47d   : > { %v6763_v7 = vpop.f32.mrb[31].mxu1  ;;  %2561 = vmax.xlane.f32.xlu0 %v2560_v3  ;;  %2570 = vmax.xlane.f32.xlu1 %v2569_v5  ;;  %v2542_v9 = vpop.f32.mrb[30].mxu0  ;;  %v8079_v15 = vmul.f32 0.25, %v2464_v2 }
 0x47e   : > { %v2553_v11 = vmul.f32 0.25, %v2542_v9  ;;  %v6768_v13 = vpop.f32.mrb[31].mxu0 }
 0x47f   : > { %v2572_v20 = vsel %vm609_vm3, %v8079_v15, -inf }
 0x480   : > { %v2575_v19 = vsel %vm609_vm3, %v2553_v11, -inf }
 0x481   : > { %2567 = vmax.xlane.f32.xlu0 %v2566_v17  ;;  %2576 = vmax.xlane.f32.xlu1 %v2575_v19 }
 0x485   : > { %2573 = vmax.xlane.f32.xlu0 %v2572_v20 }
 0x492   : > { %2718 = vrot.lane.b32.xlu1 %v7768_v26, %s7439_s11 }
 0x496   : > { %2794 = vrot.lane.b32.xlu1 %v7786_v31, %s7439_s11 }
 0x49a   : > { %2870 = vrot.lane.b32.xlu1 %v7782_v30, %s7439_s11 }
 0x49b   : > { %2642 = vrot.lane.b32.xlu0 %v7770_v27, %s7439_s11 }
 0x49e   : > { %3022 = vrot.lane.b32.xlu1 %v7803_v34, %s7439_s11 }
 0x49f   : > { %2946 = vrot.lane.b32.xlu0 %v7808_v35, %s7439_s11 }
 0x4a2   : > { %3174 = vrot.lane.b32.xlu1 %v7825_v38, %s7439_s11 }
 0x4a3   : > { %3098 = vrot.lane.b32.xlu0 %v7830_v39, %s7439_s11  ;;  %s7317_s11 = scalar_lea.vmem %s8805_s6, 1024 }
 0x4a4   : > { %p7318_p1 = scmp.ne.s32.totalorder %s8805_s6, %s7317_s11 }
 0x4a6   : > { %3330 = vrot.lane.b32.xlu1 %v7768_v26, %s7440_s14  ;;  %p7319_p6 = pnand %p7318_p1, %p8984_p13 }
 0x4a7   : > { %3252 = vrot.lane.b32.xlu0 %v7770_v27, %s7440_s14 }
 0x4a8   : > { %p7320_p10 = pneg %p7319_p6 }
 0x4aa   : > { %3328 = vrot.lane.b32.xlu1 %v7777_v28, %s7440_s14 }
 0x4ab   : > { %3250 = vrot.lane.b32.xlu0 %v7780_v29, %s7440_s14 }
 0x4ae   : > { %3486 = vrot.lane.b32.xlu1 %v7782_v30, %s7440_s14 }
 0x4af   : > { %3408 = vrot.lane.b32.xlu0 %v7786_v31, %s7440_s14 }
 0x501   : > { %v2556_v22 = vpop.xlane.xlu0 %2555 }
 0x502   : > { %v2578_v23 = vsub.f32 %v2546_v21, %v2556_v22  ;;  %v2559_v43 = vpop.xlane.xlu1 %2558 }
 0x503   : > { %v2579_v44 = vsub.f32 %v2547_v42, %v2559_v43 }
 0x504   : > { %v2586_v46 = vmul.f32 1.442695, %v2578_v23 }
 0x505   : > { %v2588_v48 = vmul.f32 1.442695, %v2579_v44 }
 0x506   : > { %7105 = vpow2.f32 %v2586_v46  ;;  %v2565_v50 = vpop.xlane.xlu0 %2564 }
 0x507   : > { %7107 = vpow2.f32 %v2588_v48  ;;  %v2581_v51 = vsub.f32 %v2549_v52, %v2565_v50 }
 0x509   : > { %v2592_v54 = vmul.f32 1.442695, %v2581_v51 }
 0x50a   : > { %v2562_v57 = vpop.xlane.xlu0 %2561  ;;  %v2571_v60 = vpop.xlane.xlu1 %2570 }
 0x50b   : > { %7109 = vpow2.f32 %v2592_v54  ;;  %v2580_v61 = vsub.f32 %v2548_v56, %v2562_v57  ;;  %v2583_v62 = vsub.f32 %v2551_v63, %v2571_v60 }
 0x50d   : > { %v2590_v0 = vmul.f32 1.442695, %v2580_v61  ;;  %v2596_v2 = vmul.f32 1.442695, %v2583_v62 }
 0x50e   : > { %v2568_v3 = vpop.xlane.xlu0 %2567  ;;  %v2577_v5 = vpop.xlane.xlu1 %2576 }
 0x50f   : > { %7111 = vpow2.f32 %v2590_v0  ;;  %v2582_v21 = vsub.f32 %v2550_v1, %v2568_v3  ;;  %v2585_v7 = vsub.f32 %v2553_v11, %v2577_v5 }
 0x510   : > { %v8105_v42 = vpop.eup %7105  ;;  %7113 = vpow2.f32 %v2596_v2 }
 0x511   : > { %v8107_v9 = vpop.eup %7107  ;;  %v2594_v13 = vmul.f32 1.442695, %v2582_v21  ;;  %v2600_v52 = vmul.f32 1.442695, %v2585_v7  ;;  %v2602_v17 = vsel %vm609_vm3, %v8105_v42, 0.0 }
 0x512   : > { %2603 = vadd.xlane.f32.xlu0 %v2602_v17  ;;  %v2574_v56 = vpop.xlane.xlu0 %2573  ;;  %v2719_v63 = vpop.permute.xlu1 %2718  ;;  %v2605_v19 = vsel %vm609_vm3, %v8107_v9, 0.0 }
 0x513   : > { %7115 = vpow2.f32 %v2594_v13  ;;  %v2584_v1 = vsub.f32 %v8079_v15, %v2574_v56  ;;  %2606 = vadd.xlane.f32.xlu1 %v2605_v19  ;;  %6775 = vmatpush3.msra.mxu0 %v2719_v63 }
 0x514   : > { %7117 = vpow2.f32 %v2600_v52  ;;  %6784 = vmatprep.subr.mxu0 %v8920_v25 }
 0x515   : > { %v8115_v11 = vpop.eup %7109  ;;  %v2598_v20 = vmul.f32 1.442695, %v2584_v1 }
 0x516   : > { %v2643_v22 = vpop.permute.xlu0 %2642  ;;  %v2611_v23 = vsel %vm609_vm3, %v8115_v11, 0.0  ;;  %v2795_v61 = vpop.permute.xlu1 %2794 }
 0x517   : > { %7119 = vpow2.f32 %v2598_v20  ;;  %6770 = vmatpush3.msra.mxu1 %v2643_v22  ;;  %2612 = vadd.xlane.f32.xlu1 %v2611_v23 }
 0x518   : > { %6779 = vmatprep.subr.mxu1 %v8920_v25 }
 0x519   : > { %v8120_v43 = vpop.eup %7111 }
 0x51a   : > { %v8122_v15 = vpop.eup %7113  ;;  %v2608_v44 = vsel %vm609_vm3, %v8120_v43, 0.0  ;;  %v2871_v62 = vpop.permute.xlu1 %2870 }
 0x51b   : > { %2609 = vadd.xlane.f32.xlu0 %v2608_v44  ;;  %v2617_v46 = vsel %vm609_vm3, %v8122_v15, 0.0  ;;  %v2947_v0 = vpop.permute.xlu0 %2946 }
 0x51c   : > { %2618 = vadd.xlane.f32.xlu1 %v2617_v46 }
 0x51d   : > { %v8128_v48 = vpop.eup %7115 }
 0x51e   : > { %v8130_v50 = vpop.eup %7117  ;;  %v2614_v51 = vsel %vm609_vm3, %v8128_v48, 0.0  ;;  %v3023_v2 = vpop.permute.xlu1 %3022 }
 0x51f   : > { %2615 = vadd.xlane.f32.xlu0 %v2614_v51  ;;  %v2623_v54 = vsel %vm609_vm3, %v8130_v50, 0.0  ;;  %v8176_v3 = vpop.permute.xlu0 %3098 }
 0x520   : > { %2624 = vadd.xlane.f32.xlu1 %v2623_v54 }
 0x521   : > { %v8136_v57 = vpop.eup %7119 }
 0x522   : > { %v2620_v60 = vsel %vm609_vm3, %v8136_v57, 0.0  ;;  %v3175_v5 = vpop.permute.xlu1 %3174 }
 0x523   : > { %2621 = vadd.xlane.f32.xlu0 %v2620_v60  ;;  %v8178_v21 = vpop.permute.xlu0 %3252 }
 0x526   : > { %v8180_v7 = vpop.permute.xlu1 %3330 }
 0x527   : > { %v8182_v13 = vpop.permute.xlu0 %3250 }
 0x52a   : > { %v8184_v52 = vpop.permute.xlu1 %3328 }
 0x52b   : > { %v8186_v17 = vpop.permute.xlu0 %3408 }
 0x531   : > { %3484 = vrot.lane.b32.xlu1 %v7796_v32, %s7440_s14 }
 0x535   : > { %3642 = vrot.lane.b32.xlu1 %v7803_v34, %s7440_s14 }
 0x539   : > { %3640 = vrot.lane.b32.xlu1 %v7818_v36, %s7440_s14  ;;  %3406 = vrot.lane.b32.xlu0 %v7801_v33, %s7440_s14 }
 0x53d   : > { %3798 = vrot.lane.b32.xlu1 %v7825_v38, %s7440_s14  ;;  %3564 = vrot.lane.b32.xlu0 %v7808_v35, %s7440_s14 }
 0x541   : > { %3796 = vrot.lane.b32.xlu1 %v7840_v40, %s7440_s14  ;;  %3562 = vrot.lane.b32.xlu0 %v7823_v37, %s7440_s14 }
 0x545   : > { %4046 = vrot.lane.b32.xlu1 %v7768_v26, %s7441_s2  ;;  %3720 = vrot.lane.b32.xlu0 %v7830_v39, %s7440_s14 }
 0x549   : > { %4122 = vrot.lane.b32.xlu1 %v7786_v31, %s7441_s2  ;;  %3718 = vrot.lane.b32.xlu0 %v7845_v41, %s7440_s14  ;;  %s7447_s14 = smov [#allocation10]  }
 0x54d   : > { %4198 = vrot.lane.b32.xlu1 %v7782_v30, %s7441_s2  ;;  %3970 = vrot.lane.b32.xlu0 %v7770_v27, %s7441_s2 }
 0x551   : > { %4350 = vrot.lane.b32.xlu1 %v7803_v34, %s7441_s2  ;;  %4274 = vrot.lane.b32.xlu0 %v7808_v35, %s7441_s2 }
 0x555   : > { %4502 = vrot.lane.b32.xlu1 %v7825_v38, %s7441_s2  ;;  %4426 = vrot.lane.b32.xlu0 %v7830_v39, %s7441_s2  ;;  %s7321_s2 = sshll.u32 %s7447_s14, 4  ;;  %s7322_s2 = int_to_ptr.vmem [resolvable:$false] %s7321_s2 }
 0x556   : > { %p7324_p4 = scmp.lt.s32.totalorder %s8805_s6, %s7322_s2 }
 0x559   : > { %4658 = vrot.lane.b32.xlu1 %v7768_v26, %s7442_s16  ;;  %4580 = vrot.lane.b32.xlu0 %v7770_v27, %s7442_s16 }
 0x55d   : > { %4656 = vrot.lane.b32.xlu1 %v7777_v28, %s7442_s16  ;;  %4578 = vrot.lane.b32.xlu0 %v7780_v29, %s7442_s16  ;;  %v8188_v28 = vpop.permute.xlu1 %3486 }
 0x59f   : > { %v2604_v29 = vpop.xlane.xlu0 %2603 }
 0x5a0   : > { %7121 = vrcp.f32 %v2604_v29  ;;  %v2607_v56 = vpop.xlane.xlu1 %2606 }
 0x5a1   : > { %7123 = vrcp.f32 %v2607_v56 }
 0x5a4   : > { %v2613_v63 = vpop.xlane.xlu1 %2612 }
 0x5a5   : > { %7125 = vrcp.f32 %v2613_v63 }
 0x5a8   : > { %v2610_v19 = vpop.xlane.xlu0 %2609 }
 0x5a9   : > { %7127 = vrcp.f32 %v2610_v19  ;;  %v2619_v1 = vpop.xlane.xlu1 %2618 }
 0x5aa   : > { %v7122_v20 = vpop.eup %7121  ;;  %7129 = vrcp.f32 %v2619_v1 }
 0x5ab   : > { %v7124_v22 = vpop.eup %7123  ;;  %v8191_v23 = vmul.f32 %v7122_v20, %v8105_v42 }
 0x5ac   : > { %v2616_v44 = vpop.xlane.xlu0 %2615  ;;  %v8194_v46 = vmul.f32 %v7124_v22, %v8107_v9 }
 0x5ad   : > { %7131 = vrcp.f32 %v2616_v44  ;;  %v2625_v51 = vpop.xlane.xlu1 %2624  ;;  %6772 = vmatmul.mubr.msk.f32.vlgmr.msra.gmra.mrb[32].mxu1 %vm609_vm3, %v8191_v23 }
 0x5ae   : > { %7133 = vrcp.f32 %v2625_v51  ;;  %6780 = vmatpush3.msra.mxu1 %v2795_v61  ;;  %6777 = vmatmul.mubr.msk.f32.vlgmr.msra.gmra.mrb[32].mxu0 %vm609_vm3, %v8194_v46 }
 0x5af   : > { %v7126_v54 = vpop.eup %7125  ;;  %6785 = vmatpush3.msra.mxu0 %v2871_v62  ;;  %6786 = vmatprep.mubr.msk.f32.mxu0 %vm7436_vm2, %v8920_v25 }
 0x5b0   : > { %v2622_v42 = vpop.xlane.xlu0 %2621  ;;  %6794 = vmatprep.subr.mxu0 %v8920_v25  ;;  %v8204_v9 = vmul.f32 %v7126_v54, %v8115_v11  ;;  %6781 = vmatprep.mubr.msk.f32.mxu1 %vm7436_vm2, %v8920_v25 }
 0x5b1   : > { %7135 = vrcp.f32 %v2622_v42  ;;  %v3485_v60 = vpop.permute.xlu1 %3484  ;;  %6789 = vmatprep.subr.mxu1 %v8920_v25 }
 0x5b2   : > { %6787 = vmatmul.mubr.msk.f32.vlgmr.msra.gmra.mrb[34].mxu0 %vm609_vm3, %v8204_v9 }
 0x5b3   : > { %v7128_v61 = vpop.eup %7127  ;;  %6795 = vmatpush3.msra.mxu0 %v3023_v2  ;;  %6796 = vmatprep.mubr.msk.f32.mxu0 %vm7436_vm2, %v8920_v25 }
 0x5b4   : > { %v7130_v62 = vpop.eup %7129  ;;  %v3407_v29 = vpop.permute.xlu0 %3406  ;;  %6804 = vmatprep.subr.mxu0 %v8920_v25  ;;  %v8215_v11 = vmul.f32 %v7128_v61, %v8120_v43 }
 0x5b5   : > { %v8218_v56 = vmul.f32 %v7130_v62, %v8122_v15  ;;  %v3643_v63 = vpop.permute.xlu1 %3642 }
 0x5b6   : > { %6782 = vmatmul.mubr.msk.f32.vlgmr.msra.gmra.mrb[34].mxu1 %vm609_vm3, %v8215_v11 }
 0x5b7   : > { %v7132_v19 = vpop.eup %7131  ;;  %6790 = vmatpush3.msra.mxu1 %v2947_v0  ;;  %6797 = vmatmul.mubr.msk.f32.vlgmr.msra.gmra.mrb[36].mxu0 %vm609_vm3, %v8218_v56 }
 0x5b8   : > { %v7134_v2 = vpop.eup %7133  ;;  %6805 = vmatpush3.msra.mxu0 %v3175_v5  ;;  %6791 = vmatprep.mubr.msk.f32.mxu1 %vm7436_vm2, %v8920_v25  ;;  %v8227_v43 = vmul.f32 %v7132_v19, %v8128_v48  ;;  %v3565_v1 = vpop.permute.xlu0 %3564 }
 0x5b9   : > { %6799 = vmatprep.subr.mxu1 %v8920_v25  ;;  %6806 = vmatprep.mubr.msk.f32.mxu0 %vm7436_vm2, %v8920_v25  ;;  %v8233_v15 = vmul.f32 %v7134_v2, %v8130_v50  ;;  %v3641_v48 = vpop.permute.xlu1 %3640 }
 0x5ba   : > { %6792 = vmatmul.mubr.msk.f32.vlgmr.msra.gmra.mrb[36].mxu1 %vm609_vm3, %v8227_v43  ;;  %6814 = vmatprep.subr.mxu0 %v8920_v25 }
 0x5bb   : > { %8965 = vst [vmem:[#allocation35_spill] sm:$0xff] %v8233_v15  ;;  %v7136_v0 = vpop.eup %7135  ;;  %6800 = vmatpush3.msra.mxu1 %v8176_v3  ;;  %6807 = vmatmul.mubr.msk.f32.vlgmr.msra.gmra.mrb[38].mxu0 %vm609_vm3, %v8233_v15 }
 0x5bc   : > { %6801 = vmatprep.mubr.msk.f32.mxu1 %vm7436_vm2, %v8920_v25  ;;  %v8244_v5 = vmul.f32 %v7136_v0, %v8136_v57  ;;  %6816 = vmatprep.mubr.msk.f32.mxu0 %vm7436_vm2, %v8920_v25  ;;  %v3563_v50 = vpop.permute.xlu0 %3562 }
 0x5bd   : > { %6809 = vmatprep.subr.mxu1 %v8920_v25  ;;  %v3799_v3 = vpop.permute.xlu1 %3798 }
 0x5be   : > { %6802 = vmatmul.mubr.msk.f32.vlgmr.msra.gmra.mrb[38].mxu1 %vm609_vm3, %v8244_v5 }
 0x5bf   : > { %6815 = vmatpush3.xpose.msk.msra.mxu0 %vm609_vm3, %v8180_v7  ;;  %6811 = vmatprep.mubr.msk.f32.mxu1 %vm7436_vm2, %v8920_v25 }
 0x5c0   : > { %6824 = vmatprep.subr.mxu0 %v8920_v25  ;;  %v3721_v57 = vpop.permute.xlu0 %3720 }
 0x5c2   : > { %6817 = vmatmul.mubr.msk.f32.vlgmr.msra.gmra.mrb[40].mxu0 %vm609_vm3, %v8184_v52  ;;  %6810 = vmatpush3.xpose.msk.msra.mxu1 %vm609_vm3, %v8178_v21  ;;  %v3797_v21 = vpop.permute.xlu1 %3796 }
 0x5c3   : > { %6825 = vmatpush3.xpose.msk.msra.mxu0 %vm609_vm3, %v8188_v28  ;;  %6826 = vmatprep.mubr.msk.f32.mxu0 %vm7436_vm2, %v8920_v25 }
 0x5c4   : > { %6819 = vmatprep.subr.mxu1 %v8920_v25  ;;  %6834 = vmatprep.subr.mxu0 %v8920_v25  ;;  %v3719_v7 = vpop.permute.xlu0 %3718 }
 0x5c5   : > { %6812 = vmatmul.mubr.msk.f32.vlgmr.msra.gmra.mrb[40].mxu1 %vm609_vm3, %v8182_v13 }
 0x5c6   : > { %6827 = vmatmul.mubr.msk.f32.vlgmr.msra.gmra.mrb[42].mxu0 %vm609_vm3, %v3485_v60  ;;  %6820 = vmatpush3.xpose.msk.msra.mxu1 %vm609_vm3, %v8186_v17  ;;  %v4047_v13 = vpop.permute.xlu1 %4046 }
 0x5c7   : > { %6835 = vmatpush3.xpose.msk.msra.mxu0 %vm609_vm3, %v3643_v63  ;;  %6821 = vmatprep.mubr.msk.f32.mxu1 %vm7436_vm2, %v8920_v25 }
 0x5c8   : > { %6836 = vmatprep.mubr.msk.f32.mxu0 %vm7436_vm2, %v8920_v25  ;;  %6829 = vmatprep.subr.mxu1 %v8920_v25  ;;  %v3971_v52 = vpop.permute.xlu0 %3970 }
 0x5c9   : > { %6822 = vmatmul.mubr.msk.f32.vlgmr.msra.gmra.mrb[42].mxu1 %vm609_vm3, %v3407_v29  ;;  %6844 = vmatprep.subr.mxu0 %v8920_v25 }
 0x5ca   : > { %6837 = vmatmul.mubr.msk.f32.vlgmr.msra.gmra.mrb[44].mxu0 %vm609_vm3, %v3641_v48  ;;  %6830 = vmatpush3.xpose.msk.msra.mxu1 %vm609_vm3, %v3565_v1 }
 0x5cb   : > { %6845 = vmatpush3.xpose.msk.msra.mxu0 %vm609_vm3, %v3799_v3  ;;  %6831 = vmatprep.mubr.msk.f32.mxu1 %vm7436_vm2, %v8920_v25 }
 0x5cc   : > { %6846 = vmatprep.mubr.msk.f32.mxu0 %vm7436_vm2, %v8920_v25  ;;  %6839 = vmatprep.subr.mxu1 %v8920_v25 }
 0x5cd   : > { %6832 = vmatmul.mubr.msk.f32.vlgmr.msra.gmra.mrb[44].mxu1 %vm609_vm3, %v3563_v50  ;;  %6854 = vmatprep.subr.mxu0 %v8920_v25 }
 0x5ce   : > { %6847 = vmatmul.mubr.msk.f32.vlgmr.msra.gmra.mrb[46].mxu0 %vm609_vm3, %v3797_v21  ;;  %6840 = vmatpush3.xpose.msk.msra.mxu1 %vm609_vm3, %v3721_v57 }
 0x5cf   : > { %6855 = vmatpush3.msra.mxu0 %v4047_v13  ;;  %6841 = vmatprep.mubr.msk.f32.mxu1 %vm7436_vm2, %v8920_v25 }
 0x5d0   : > { %6849 = vmatprep.subr.mxu1 %v8920_v25  ;;  %6856 = vmatprep.mubr.msk.f32.mxu0 %vm7436_vm2, %v8920_v25 }
 0x5d1   : > { %6842 = vmatmul.mubr.msk.f32.vlgmr.msra.gmra.mrb[46].mxu1 %vm609_vm3, %v3719_v7  ;;  %6864 = vmatprep.subr.mxu0 %v8920_v25 }
 0x5d2   : > { %6850 = vmatpush3.msra.mxu1 %v3971_v52  ;;  %6851 = vmatprep.mubr.msk.f32.mxu1 %vm7436_vm2, %v8920_v25 }
 0x5d3   : > { %6859 = vmatprep.subr.mxu1 %v8920_v25 }
 0x680   : > { %v8301_v17 = vpop.f32.mrb[32].mxu1 }
 0x681   : > { %v6773_v28 = vpop.f32.mrb[33].mxu1  ;;  %v8303_v20 = vpop.f32.mrb[32].mxu0 }
 0x682   : > { %v6778_v22 = vpop.f32.mrb[33].mxu0 }
 0x685   : > { %v8305_v44 = vpop.f32.mrb[34].mxu0 }
 0x686   : > { %v6788_v51 = vpop.f32.mrb[35].mxu0 }
 0x689   : > { %v8307_v54 = vpop.f32.mrb[34].mxu1 }
 0x68a   : > { %v8309_v42 = vpop.f32.mrb[36].mxu0  ;;  %v6783_v60 = vpop.f32.mrb[35].mxu1 }
 0x68b   : > { %v6798_v61 = vpop.f32.mrb[37].mxu0 }
 0x68d   : > { %v8311_v62 = vpop.f32.mrb[36].mxu1 }
 0x68e   : > { %v8313_v29 = vpop.f32.mrb[38].mxu0  ;;  %v6793_v63 = vpop.f32.mrb[37].mxu1 }
 0x68f   : > { %v6808_v19 = vpop.f32.mrb[39].mxu0 }
 0x691   : > { %v8315_v2 = vpop.f32.mrb[38].mxu1 }
 0x692   : > { %v6803_v1 = vpop.f32.mrb[39].mxu1 }
 0x695   : > { %v3402_v0 = vpop.f32.mrb[40].mxu0 }
 0x696   : > { %v3875_v48 = vmul.f32 0.25, %v3402_v0  ;;  %v6818_v50 = vpop.f32.mrb[41].mxu0 }
 0x698   : > { %v3324_v3 = vpop.f32.mrb[40].mxu1  ;;  %v3885_v57 = vsel %vm609_vm3, %v3875_v48, -inf }
 0x699   : > { %v3874_v21 = vmul.f32 0.25, %v3324_v3  ;;  %3886 = vmax.xlane.f32.xlu1 %v3885_v57  ;;  %v3558_v7 = vpop.f32.mrb[42].mxu0  ;;  %v6813_v13 = vpop.f32.mrb[41].mxu1 }
 0x69a   : > { %v6828_v52 = vpop.f32.mrb[43].mxu0  ;;  %v3877_v28 = vmul.f32 0.25, %v3558_v7 }
 0x69b   : > { %v3882_v22 = vsel %vm609_vm3, %v3874_v21, -inf }
 0x69c   : > { %3883 = vmax.xlane.f32.xlu0 %v3882_v22  ;;  %v3480_v51 = vpop.f32.mrb[42].mxu1  ;;  %v3891_v0 = vsel %vm609_vm3, %v3877_v28, -inf }
 0x69d   : > { %v3714_v60 = vpop.f32.mrb[44].mxu0  ;;  %v6823_v61 = vpop.f32.mrb[43].mxu1  ;;  %v3876_v1 = vmul.f32 0.25, %v3480_v51 }
 0x69e   : > { %v3879_v63 = vmul.f32 0.25, %v3714_v60  ;;  %v6838_v19 = vpop.f32.mrb[45].mxu0 }
 0x69f   : > { %v3888_v22 = vsel %vm609_vm3, %v3876_v1, -inf }
 0x6a0   : > { %v3636_v50 = vpop.f32.mrb[44].mxu1  ;;  %3892 = vmax.xlane.f32.xlu0 %v3891_v0  ;;  %v3897_v3 = vsel %vm609_vm3, %v3879_v63, -inf }
 0x6a1   : > { %3898 = vmax.xlane.f32.xlu1 %v3897_v3  ;;  %v3870_v57 = vpop.f32.mrb[46].mxu0  ;;  %v6833_v13 = vpop.f32.mrb[45].mxu1  ;;  %v3878_v25 = vmul.f32 0.25, %v3636_v50 }
 0x6a2   : > { %v8321_v52 = vmul.f32 0.25, %v3870_v57  ;;  %v6848_v7 = vpop.f32.mrb[47].mxu0  ;;  %v8335_v50 = vpop.permute.xlu1 %4122 }
 0x6a3   : > { %v3894_v19 = vsel %vm609_vm3, %v3878_v25, -inf }
 0x6a4   : > { %v3792_v53 = vpop.f32.mrb[46].mxu1  ;;  %3889 = vmax.xlane.f32.xlu0 %v3888_v22  ;;  %v3903_v51 = vsel %vm609_vm3, %v8321_v52, -inf }
 0x6a5   : > { %3904 = vmax.xlane.f32.xlu1 %v3903_v51  ;;  %v6843_v60 = vpop.f32.mrb[47].mxu1  ;;  %v8326_v61 = vmul.f32 0.25, %v3792_v53  ;;  %v8341_v53 = vpop.permute.xlu0 %4274 }
 0x6a6   : > { %v8337_v3 = vpop.permute.xlu1 %4198 }
 0x6a7   : > { %v3900_v0 = vsel %vm609_vm3, %v8326_v61, -inf }
 0x6a8   : > { %3895 = vmax.xlane.f32.xlu0 %v3894_v19 }
 0x6a9   : > { %v8345_v7 = vpop.permute.xlu0 %4426 }
 0x6aa   : > { %v8339_v57 = vpop.permute.xlu1 %4350 }
 0x6ac   : > { %3901 = vmax.xlane.f32.xlu0 %v3900_v0 }
 0x6ad   : > { %v8349_v51 = vpop.permute.xlu0 %4580 }
 0x6ae   : > { %v8343_v13 = vpop.permute.xlu1 %4502 }
 0x6b1   : > { %v8353_v19 = vpop.permute.xlu0 %4578 }
 0x6b2   : > { %v8347_v22 = vpop.permute.xlu1 %4658 }
 0x6b6   : > { %4814 = vrot.lane.b32.xlu1 %v7782_v30, %s7442_s16  ;;  %v8351_v60 = vpop.permute.xlu1 %4656 }
 0x6c2   : > { %4736 = vrot.lane.b32.xlu0 %v7786_v31, %s7442_s16 }
 0x726   : > { %v3887_v0 = vpop.xlane.xlu1 %3886 }
 0x727   : > { %v3907_v55 = vsub.f32 %v3875_v48, %v3887_v0 }
 0x729   : > { %v3916_v47 = vmul.f32 1.442695, %v3907_v55  ;;  %v3884_v49 = vpop.xlane.xlu0 %3883 }
 0x72a   : > { %v3906_v24 = vsub.f32 %v3874_v21, %v3884_v49 }
 0x72b   : > { %7137 = vpow2.f32 %v3916_v47 }
 0x72c   : > { %v3914_v45 = vmul.f32 1.442695, %v3906_v24 }
 0x72d   : > { %v3893_v59 = vpop.xlane.xlu0 %3892 }
 0x72e   : > { %7139 = vpow2.f32 %v3914_v45  ;;  %v3909_v58 = vsub.f32 %v3877_v28, %v3893_v59  ;;  %v3899_v16 = vpop.xlane.xlu1 %3898 }
 0x72f   : > { %v3911_v18 = vsub.f32 %v3879_v63, %v3899_v16 }
 0x730   : > { %v3920_v12 = vmul.f32 1.442695, %v3909_v58 }
 0x731   : > { %v3924_v14 = vmul.f32 1.442695, %v3911_v18  ;;  %v3890_v8 = vpop.xlane.xlu0 %3889 }
 0x732   : > { %7141 = vpow2.f32 %v3920_v12  ;;  %v3908_v10 = vsub.f32 %v3876_v1, %v3890_v8  ;;  %v3905_v16 = vpop.xlane.xlu1 %3904 }
 0x733   : > { %7143 = vpow2.f32 %v3924_v14  ;;  %v3913_v18 = vsub.f32 %v8321_v52, %v3905_v16 }
 0x734   : > { %v3918_v4 = vmul.f32 1.442695, %v3908_v10 }
 0x735   : > { %v7138_v6 = vpop.eup %7137  ;;  %v3896_v15 = vpop.xlane.xlu0 %3895  ;;  %v3928_v48 = vmul.f32 1.442695, %v3913_v18 }
 0x736   : > { %7145 = vpow2.f32 %v3918_v4  ;;  %v3910_v55 = vsub.f32 %v3878_v25, %v3896_v15  ;;  %v3933_v49 = vsel %vm609_vm3, %v7138_v6, 0.0 }
 0x737   : > { %3934 = vadd.xlane.f32.xlu1 %v3933_v49 }
 0x738   : > { %v7140_v24 = vpop.eup %7139  ;;  %v3922_v47 = vmul.f32 1.442695, %v3910_v55 }
 0x739   : > { %v3930_v45 = vsel %vm609_vm3, %v7140_v24, 0.0  ;;  %v3902_v15 = vpop.xlane.xlu0 %3901 }
 0x73a   : > { %7147 = vpow2.f32 %v3922_v47  ;;  %3931 = vadd.xlane.f32.xlu0 %v3930_v45  ;;  %v3912_v21 = vsub.f32 %v8326_v61, %v3902_v15 }
 0x73b   : > { %7149 = vpow2.f32 %v3928_v48 }
 0x73c   : > { %v7142_v58 = vpop.eup %7141  ;;  %v3926_v28 = vmul.f32 1.442695, %v3912_v21 }
 0x73d   : > { %v3939_v59 = vsel %vm609_vm3, %v7142_v58, 0.0  ;;  %v8358_v12 = vpop.eup %7143 }
 0x73e   : > { %3940 = vadd.xlane.f32.xlu1 %v3939_v59  ;;  %v3945_v4 = vsel %vm609_vm3, %v8358_v12, 0.0  ;;  %7151 = vpow2.f32 %v3926_v28 }
 0x740   : > { %v8360_v8 = vpop.eup %7145 }
 0x741   : > { %v3936_v25 = vsel %vm609_vm3, %v8360_v8, 0.0 }
 0x742   : > { %3937 = vadd.xlane.f32.xlu0 %v3936_v25  ;;  %3946 = vadd.xlane.f32.xlu1 %v3945_v4  ;;  %v8966_v25 = vmov 0.0  }
 0x744   : > { %v8366_v10 = vpop.eup %7147 }
 0x745   : > { %v3942_v14 = vsel %vm609_vm3, %v8366_v10, 0.0  ;;  %v8376_v63 = vpop.eup %7149 }
 0x746   : > { %3943 = vadd.xlane.f32.xlu0 %v3942_v14  ;;  %v3951_v1 = vsel %vm609_vm3, %v8376_v63, 0.0 }
 0x748   : > { %v8380_v0 = vpop.eup %7151 }
 0x753   : > { %4812 = vrot.lane.b32.xlu1 %v7796_v32, %s7442_s16  ;;  %v3948_v32 = vsel %vm609_vm3, %v8380_v0, 0.0 }
 0x75c   : > { %4734 = vrot.lane.b32.xlu0 %v7801_v33, %s7442_s16  ;;  %v8400_v33 = vpop.permute.xlu1 %4814 }
 0x777   : > { %3952 = vadd.xlane.f32.xlu1 %v3951_v1 }
 0x77b   : > { %3949 = vadd.xlane.f32.xlu0 %v3948_v32 }
 0x788   : > { %4970 = vrot.lane.b32.xlu1 %v7803_v34, %s7442_s16 }
 0x78c   : > { %4968 = vrot.lane.b32.xlu1 %v7818_v36, %s7442_s16  ;;  %v8402_v36 = vpop.permute.xlu0 %4736 }
 0x790   : > { %5126 = vrot.lane.b32.xlu1 %v7825_v38, %s7442_s16 }
 0x791   : > { %4892 = vrot.lane.b32.xlu0 %v7808_v35, %s7442_s16 }
 0x794   : > { %5124 = vrot.lane.b32.xlu1 %v7840_v40, %s7442_s16 }
 0x795   : > { %4890 = vrot.lane.b32.xlu0 %v7823_v37, %s7442_s16 }
 0x799   : > { %5048 = vrot.lane.b32.xlu0 %v7830_v39, %s7442_s16 }
 0x79d   : > { %5046 = vrot.lane.b32.xlu0 %v7845_v41, %s7442_s16  ;;  %s7323_s16 = scalar_lea.vmem %s7322_s2, 2048 }
 0x79e   : > { %p7325_p5 = scmp.lt.s32.totalorder %s7323_s16, %s7317_s11 }
 0x7a0   : > { %p7326_p3 = por %p7325_p5, %p7324_p4 }
 0x7a2   : > { %p7327_p7 = pnand %p7326_p3, %p7320_p10 }
 0x7c4   : > { %v3935_v52 = vpop.xlane.xlu1 %3934 }
 0x7c5   : > { %7153 = vrcp.f32 %v3935_v52 }
 0x7c7   : > { %v3932_v61 = vpop.xlane.xlu0 %3931 }
 0x7c8   : > { %7155 = vrcp.f32 %v3932_v61 }
 0x7cb   : > { %v3941_v55 = vpop.xlane.xlu1 %3940 }
 0x7cc   : > { %7157 = vrcp.f32 %v3941_v55 }
 0x7cf   : > { %v7154_v40 = vpop.eup %7153  ;;  %v3938_v49 = vpop.xlane.xlu0 %3937 }
 0x7d0   : > { %v3947_v47 = vpop.xlane.xlu1 %3946  ;;  %v8404_v37 = vmul.f32 %v7154_v40, %v7138_v6  ;;  %7159 = vrcp.f32 %v3938_v49 }
 0x7d1   : > { %7161 = vrcp.f32 %v3947_v47 }
 0x7d2   : > { %v7156_v45 = vpop.eup %7155  ;;  %6857 = vmatmul.mubr.msk.f32.vlgmr.msra.gmra.mrb[48].mxu0 %vm609_vm3, %v8404_v37 }
 0x7d3   : > { %v8408_v41 = vmul.f32 %v7156_v45, %v7140_v24  ;;  %6865 = vmatpush3.msra.mxu0 %v8337_v3  ;;  %v3944_v59 = vpop.xlane.xlu0 %3943  ;;  %6866 = vmatprep.mubr.msk.f32.mxu0 %vm7436_vm2, %v8966_v25 }
 0x7d4   : > { %7163 = vrcp.f32 %v3944_v59  ;;  %6874 = vmatprep.subr.mxu0 %v8966_v25 }
 0x7d5   : > { %6852 = vmatmul.mubr.msk.f32.vlgmr.msra.gmra.mrb[48].mxu1 %vm609_vm3, %v8408_v41 }
 0x7d6   : > { %v7158_v6 = vpop.eup %7157  ;;  %6860 = vmatpush3.msra.mxu1 %v8335_v50  ;;  %6861 = vmatprep.mubr.msk.f32.mxu1 %vm7436_vm2, %v8966_v25 }
 0x7d7   : > { %v8419_v24 = vmul.f32 %v7158_v6, %v7142_v58  ;;  %6869 = vmatprep.subr.mxu1 %v8966_v25 }
 0x7d9   : > { %6867 = vmatmul.mubr.msk.f32.vlgmr.msra.gmra.mrb[50].mxu0 %vm609_vm3, %v8419_v24 }
 0x7da   : > { %v7160_v3 = vpop.eup %7159  ;;  %6875 = vmatpush3.msra.mxu0 %v8339_v57  ;;  %6876 = vmatprep.mubr.msk.f32.mxu0 %vm7436_vm2, %v8966_v25 }
 0x7db   : > { %v7162_v4 = vpop.eup %7161  ;;  %v8428_v14 = vmul.f32 %v7160_v3, %v8360_v8  ;;  %6884 = vmatprep.subr.mxu0 %v8966_v25 }
 0x7dc   : > { %v8432_v50 = vmul.f32 %v7162_v4, %v8358_v12 }
 0x7dd   : > { %6862 = vmatmul.mubr.msk.f32.vlgmr.msra.gmra.mrb[50].mxu1 %vm609_vm3, %v8428_v14 }
 0x7de   : > { %v7164_v58 = vpop.eup %7163  ;;  %6870 = vmatpush3.msra.mxu1 %v8341_v53  ;;  %6877 = vmatmul.mubr.msk.f32.vlgmr.msra.gmra.mrb[52].mxu0 %vm609_vm3, %v8432_v50  ;;  %v4813_v53 = vpop.permute.xlu1 %4812 }
 0x7df   : > { %v8440_v57 = vmul.f32 %v7164_v58, %v8366_v10  ;;  %6885 = vmatpush3.msra.mxu0 %v8343_v13  ;;  %6871 = vmatprep.mubr.msk.f32.mxu1 %vm7436_vm2, %v8966_v25  ;;  %v4735_v13 = vpop.permute.xlu0 %4734 }
 0x7e0   : > { %6879 = vmatprep.subr.mxu1 %v8966_v25  ;;  %6886 = vmatprep.mubr.msk.f32.mxu0 %vm7436_vm2, %v8966_v25 }
 0x7e1   : > { %6872 = vmatmul.mubr.msk.f32.vlgmr.msra.gmra.mrb[52].mxu1 %vm609_vm3, %v8440_v57  ;;  %6894 = vmatprep.subr.mxu0 %v8966_v25 }
 0x7e2   : > { %6880 = vmatpush3.msra.mxu1 %v8345_v7  ;;  %6881 = vmatprep.mubr.msk.f32.mxu1 %vm7436_vm2, %v8966_v25 }
 0x7e3   : > { %6889 = vmatprep.subr.mxu1 %v8966_v25 }
 0x804   : > { %v3953_v12 = vpop.xlane.xlu1 %3952 }
 0x805   : > { %7165 = vrcp.f32 %v3953_v12 }
 0x808   : > { %v3950_v8 = vpop.xlane.xlu0 %3949  ;;  %v4971_v16 = vpop.permute.xlu1 %4970 }
 0x809   : > { %7167 = vrcp.f32 %v3950_v8 }
 0x80c   : > { %v4893_v15 = vpop.permute.xlu0 %4892  ;;  %v4969_v21 = vpop.permute.xlu1 %4968 }
 0x80f   : > { %v7166_v10 = vpop.eup %7165 }
 0x810   : > { %v8456_v18 = vmul.f32 %v7166_v10, %v8376_v63 }
 0x812   : > { %6887 = vmatmul.mubr.msk.f32.vlgmr.msra.gmra.mrb[54].mxu0 %vm609_vm3, %v8456_v18 }
 0x813   : > { %v7168_v7 = vpop.eup %7167  ;;  %6895 = vmatpush3.xpose.msk.msra.mxu0 %vm609_vm3, %v8347_v22  ;;  %6896 = vmatprep.mubr.msk.f32.mxu0 %vm7436_vm2, %v8966_v25  ;;  %v4891_v22 = vpop.permute.xlu0 %4890 }
 0x814   : > { %v8465_v48 = vmul.f32 %v7168_v7, %v8380_v0  ;;  %6904 = vmatprep.subr.mxu0 %v8966_v25 }
 0x816   : > { %6882 = vmatmul.mubr.msk.f32.vlgmr.msra.gmra.mrb[54].mxu1 %vm609_vm3, %v8465_v48  ;;  %6897 = vmatmul.mubr.msk.f32.vlgmr.msra.gmra.mrb[56].mxu0 %vm609_vm3, %v8351_v60 }
 0x817   : > { %6890 = vmatpush3.xpose.msk.msra.mxu1 %vm609_vm3, %v8349_v51  ;;  %6905 = vmatpush3.xpose.msk.msra.mxu0 %vm609_vm3, %v8400_v33  ;;  %v5127_v51 = vpop.permute.xlu1 %5126  ;;  %v5049_v60 = vpop.permute.xlu0 %5048 }
 0x818   : > { %6891 = vmatprep.mubr.msk.f32.mxu1 %vm7436_vm2, %v8966_v25  ;;  %6899 = vmatprep.subr.mxu1 %v8966_v25 }
 0x819   : > { %6906 = vmatprep.mubr.msk.f32.mxu0 %vm7436_vm2, %v8966_v25  ;;  %6914 = vmatprep.subr.mxu0 %v8966_v25 }
 0x81a   : > { %6892 = vmatmul.mubr.msk.f32.vlgmr.msra.gmra.mrb[56].mxu1 %vm609_vm3, %v8353_v19  ;;  %6907 = vmatmul.mubr.msk.f32.vlgmr.msra.gmra.mrb[58].mxu0 %vm609_vm3, %v4813_v53 }
 0x81b   : > { %6900 = vmatpush3.xpose.msk.msra.mxu1 %vm609_vm3, %v8402_v36  ;;  %6915 = vmatpush3.xpose.msk.msra.mxu0 %vm609_vm3, %v4971_v16  ;;  %v5125_v19 = vpop.permute.xlu1 %5124  ;;  %v5047_v28 = vpop.permute.xlu0 %5046 }
 0x81c   : > { %6901 = vmatprep.mubr.msk.f32.mxu1 %vm7436_vm2, %v8966_v25  ;;  %6909 = vmatprep.subr.mxu1 %v8966_v25 }
 0x81d   : > { %6916 = vmatprep.mubr.msk.f32.mxu0 %vm7436_vm2, %v8966_v25  ;;  %6924 = vmatprep.subr.mxu0 %v8966_v25 }
 0x81e   : > { %6902 = vmatmul.mubr.msk.f32.vlgmr.msra.gmra.mrb[58].mxu1 %vm609_vm3, %v4735_v13  ;;  %6917 = vmatmul.mubr.msk.f32.vlgmr.msra.gmra.mrb[60].mxu0 %vm609_vm3, %v4969_v21 }
 0x81f   : > { %6910 = vmatpush3.xpose.msk.msra.mxu1 %vm609_vm3, %v4893_v15  ;;  %6925 = vmatpush3.xpose.msk.msra.mxu0 %vm609_vm3, %v5127_v51 }
 0x820   : > { %6911 = vmatprep.mubr.msk.f32.mxu1 %vm7436_vm2, %v8966_v25  ;;  %6919 = vmatprep.subr.mxu1 %v8966_v25 }
 0x821   : > { %6926 = vmatprep.mubr.msk.f32.mxu0 %vm7436_vm2, %v8966_v25  ;;  %6934 = vmatprep.subr.mxu0 %v8966_v25 }
 0x822   : > { %6912 = vmatmul.mubr.msk.f32.vlgmr.msra.gmra.mrb[60].mxu1 %vm609_vm3, %v4891_v22  ;;  %6927 = vmatmul.mubr.msk.f32.vlgmr.msra.gmra.mrb[62].mxu0 %vm609_vm3, %v5125_v19 }
 0x823   : > { %6920 = vmatpush3.xpose.msk.msra.mxu1 %vm609_vm3, %v5049_v60  ;;  %6921 = vmatprep.mubr.msk.f32.mxu1 %vm7436_vm2, %v8966_v25 }
 0x824   : > { %6929 = vmatprep.subr.mxu1 %v8966_v25  ;;  %6936 = vmatprep.mubr.msk.f32.mxu0 %vm7436_vm2, %v8966_v25 }
 0x826   : > { %6922 = vmatmul.mubr.msk.f32.vlgmr.msra.gmra.mrb[62].mxu1 %vm609_vm3, %v5047_v28 }
 0x827   : > { %6931 = vmatprep.mubr.msk.f32.mxu1 %vm7436_vm2, %v8966_v25 }
 0x8a5   : > { %v8515_v63 = vpop.f32.mrb[48].mxu0 }
 0x8a6   : > { %v6858_v1 = vpop.f32.mrb[49].mxu0 }
 0x8a8   : > { %v8517_v0 = vpop.f32.mrb[48].mxu1 }
 0x8a9   : > { %v6853_v32 = vpop.f32.mrb[49].mxu1 }
 0x8ac   : > { %v8519_v33 = vpop.f32.mrb[50].mxu0 }
 0x8ad   : > { %v6868_v36 = vpop.f32.mrb[51].mxu0 }
 0x8b0   : > { %v8521_v52 = vpop.f32.mrb[50].mxu1 }
 0x8b1   : > { %v8523_v61 = vpop.f32.mrb[52].mxu0  ;;  %v6863_v55 = vpop.f32.mrb[51].mxu1 }
 0x8b2   : > { %v6878_v40 = vpop.f32.mrb[53].mxu0 }
 0x8b4   : > { %v8525_v49 = vpop.f32.mrb[52].mxu1 }
 0x8b5   : > { %v6873_v47 = vpop.f32.mrb[53].mxu1 }
 0x8e5   : > { %v8527_v45 = vpop.f32.mrb[54].mxu0 }
 0x8e6   : > { %v6888_v59 = vpop.f32.mrb[55].mxu0 }
 0x8e9   : > { %v8529_v6 = vpop.f32.mrb[54].mxu1  ;;  %v4730_v3 = vpop.f32.mrb[56].mxu0 }
 0x8ea   : > { %v5203_v4 = vmul.f32 0.25, %v4730_v3  ;;  %v6883_v58 = vpop.f32.mrb[55].mxu1  ;;  %v6898_v53 = vpop.f32.mrb[57].mxu0 }
 0x8ec   : > { %v5213_v13 = vsel %vm609_vm3, %v5203_v4, -inf }
 0x8ed   : > { %v4652_v12 = vpop.f32.mrb[56].mxu1  ;;  %5214 = vmax.xlane.f32.xlu1 %v5213_v13  ;;  %v4886_v8 = vpop.f32.mrb[58].mxu0 }
 0x8ee   : > { %v5202_v10 = vmul.f32 0.25, %v4652_v12  ;;  %v6893_v16 = vpop.f32.mrb[57].mxu1  ;;  %v6908_v7 = vpop.f32.mrb[59].mxu0  ;;  %v5205_v15 = vmul.f32 0.25, %v4886_v8 }
 0x8f0   : > { %v5210_v21 = vsel %vm609_vm3, %v5202_v10, -inf  ;;  %v5219_v32 = vsel %vm609_vm3, %v5205_v15, -inf }
 0x8f1   : > { %5211 = vmax.xlane.f32.xlu0 %v5210_v21  ;;  %v4808_v22 = vpop.f32.mrb[58].mxu1  ;;  %v5042_v51 = vpop.f32.mrb[60].mxu0 }
 0x8f2   : > { %v5207_v60 = vmul.f32 0.25, %v5042_v51  ;;  %v6903_v19 = vpop.f32.mrb[59].mxu1  ;;  %v6918_v28 = vpop.f32.mrb[61].mxu0  ;;  %v5204_v1 = vmul.f32 0.25, %v4808_v22 }
 0x8f4   : > { %v5225_v36 = vsel %vm609_vm3, %v5207_v60, -inf  ;;  %v5216_v53 = vsel %vm609_vm3, %v5204_v1, -inf }
 0x8f5   : > { %v4964_v55 = vpop.f32.mrb[60].mxu1  ;;  %5220 = vmax.xlane.f32.xlu0 %v5219_v32  ;;  %5226 = vmax.xlane.f32.xlu1 %v5225_v36  ;;  %v5198_v40 = vpop.f32.mrb[62].mxu0 }
 0x8f6   : > { %v5209_v47 = vmul.f32 0.25, %v5198_v40  ;;  %v6913_v59 = vpop.f32.mrb[61].mxu1  ;;  %v6928_v3 = vpop.f32.mrb[63].mxu0  ;;  %v5206_v58 = vmul.f32 0.25, %v4964_v55 }
 0x8f8   : > { %v5231_v13 = vsel %vm609_vm3, %v5209_v47, -inf  ;;  %v5222_v7 = vsel %vm609_vm3, %v5206_v58, -inf }
 0x8f9   : > { %v5120_v12 = vpop.f32.mrb[62].mxu1  ;;  %5217 = vmax.xlane.f32.xlu0 %v5216_v53  ;;  %5232 = vmax.xlane.f32.xlu1 %v5231_v13 }
 0x8fa   : > { %v6923_v8 = vpop.f32.mrb[63].mxu1  ;;  %v5208_v16 = vmul.f32 0.25, %v5120_v12 }
 0x8fc   : > { %v5228_v21 = vsel %vm609_vm3, %v5208_v16, -inf }
 0x8fd   : > { %5223 = vmax.xlane.f32.xlu0 %v5222_v7 }
 0x901   : > { %5229 = vmax.xlane.f32.xlu0 %v5228_v21 }
 0x90a   : > { %5374 = vrot.lane.b32.xlu1 %v7768_v26, %s7443_s7 }
 0x90e   : > { %5450 = vrot.lane.b32.xlu1 %v7786_v31, %s7443_s7 }
 0x912   : > { %5526 = vrot.lane.b32.xlu1 %v7782_v30, %s7443_s7 }
 0x916   : > { %5678 = vrot.lane.b32.xlu1 %v7803_v34, %s7443_s7 }
 0x917   : > { %5298 = vrot.lane.b32.xlu0 %v7770_v27, %s7443_s7 }
 0x91b   : > { %5602 = vrot.lane.b32.xlu0 %v7808_v35, %s7443_s7 }
 0x97a   : > { %v5215_v22 = vpop.xlane.xlu1 %5214 }
 0x97b   : > { %v5235_v51 = vsub.f32 %v5203_v4, %v5215_v22 }
 0x97d   : > { %v5244_v19 = vmul.f32 1.442695, %v5235_v51 }
 0x97e   : > { %v5212_v28 = vpop.xlane.xlu0 %5211 }
 0x97f   : > { %7169 = vpow2.f32 %v5244_v19  ;;  %v5234_v26 = vsub.f32 %v5202_v10, %v5212_v28 }
 0x981   : > { %v5242_v32 = vmul.f32 1.442695, %v5234_v26 }
 0x982   : > { %v5221_v31 = vpop.xlane.xlu0 %5220  ;;  %v5227_v36 = vpop.xlane.xlu1 %5226 }
 0x983   : > { %7171 = vpow2.f32 %v5242_v32  ;;  %v5237_v30 = vsub.f32 %v5205_v15, %v5221_v31  ;;  %v5239_v55 = vsub.f32 %v5207_v60, %v5227_v36 }
 0x985   : > { %v5248_v40 = vmul.f32 1.442695, %v5237_v30  ;;  %v5252_v34 = vmul.f32 1.442695, %v5239_v55 }
 0x986   : > { %v5218_v59 = vpop.xlane.xlu0 %5217  ;;  %v5233_v3 = vpop.xlane.xlu1 %5232 }
 0x987   : > { %7173 = vpow2.f32 %v5248_v40  ;;  %v5236_v27 = vsub.f32 %v5204_v1, %v5218_v59  ;;  %v5241_v53 = vsub.f32 %v5209_v47, %v5233_v3  ;;  %v8969_v3 = vld [vmem:[#allocation27_spill] sm:$0xff] }
 0x988   : > { %7175 = vpow2.f32 %v5252_v34 }
 0x989   : > { %v8551_v35 = vpop.eup %7169  ;;  %v5246_v4 = vmul.f32 1.442695, %v5236_v27  ;;  %v5256_v13 = vmul.f32 1.442695, %v5241_v53  ;;  %v8970_v53 = vld [vmem:[#allocation30_spill] sm:$0xff] }
 0x98a   : > { %v5224_v12 = vpop.xlane.xlu0 %5223  ;;  %v5375_v10 = vpop.permute.xlu1 %5374  ;;  %v5261_v8 = vsel %vm609_vm3, %v8551_v35, 0.0 }
 0x98b   : > { %7177 = vpow2.f32 %v5246_v4  ;;  %v5238_v15 = vsub.f32 %v5206_v58, %v5224_v12  ;;  %5262 = vadd.xlane.f32.xlu1 %v5261_v8  ;;  %6935 = vmatpush3.msra.mxu0 %v5375_v10  ;;  %v8971_v8 = vld [vmem:[#allocation29_spill] sm:$0xff] }
 0x98c   : > { %6944 = vmatprep.subr.mxu0 %v8966_v25  ;;  %7179 = vpow2.f32 %v5256_v13 }
 0x98d   : > { %v8556_v60 = vpop.eup %7171  ;;  %v5250_v1 = vmul.f32 1.442695, %v5238_v15 }
 0x98e   : > { %v5230_v47 = vpop.xlane.xlu0 %5229  ;;  %v5258_v7 = vsel %vm609_vm3, %v8556_v60, 0.0 }
 0x98f   : > { %7181 = vpow2.f32 %v5250_v1  ;;  %v5240_v21 = vsub.f32 %v5208_v16, %v5230_v47  ;;  %5259 = vadd.xlane.f32.xlu0 %v5258_v7 }
 0x991   : > { %v8560_v22 = vpop.eup %7173  ;;  %v5254_v51 = vmul.f32 1.442695, %v5240_v21  ;;  %v8973_v21 = vld [vmem:[#allocation31_spill] sm:$0xff] }
 0x992   : > { %v5299_v19 = vpop.permute.xlu0 %5298  ;;  %v5267_v58 = vsel %vm609_vm3, %v8560_v22, 0.0  ;;  %v8564_v28 = vpop.eup %7175 }
 0x993   : > { %7183 = vpow2.f32 %v5254_v51  ;;  %6930 = vmatpush3.msra.mxu1 %v5299_v19  ;;  %5268 = vadd.xlane.f32.xlu1 %v5267_v58  ;;  %v5273_v32 = vsel %vm609_vm3, %v8564_v28, 0.0  ;;  %v8974_v51 = vld [vmem:[#allocation34_spill] sm:$0xff] }
 0x994   : > { %6939 = vmatprep.subr.mxu1 %v8966_v25 }
 0x995   : > { %v8567_v26 = vpop.eup %7177 }
 0x996   : > { %v5264_v16 = vsel %vm609_vm3, %v8567_v26, 0.0  ;;  %v8573_v31 = vpop.eup %7179 }
 0x997   : > { %5265 = vadd.xlane.f32.xlu0 %v5264_v16  ;;  %5274 = vadd.xlane.f32.xlu1 %v5273_v32  ;;  %v5279_v55 = vsel %vm609_vm3, %v8573_v31, 0.0 }
 0x999   : > { %v8575_v36 = vpop.eup %7181 }
 0x99a   : > { %v5270_v30 = vsel %vm609_vm3, %v8575_v36, 0.0 }
 0x99b   : > { %5271 = vadd.xlane.f32.xlu0 %v5270_v30  ;;  %5280 = vadd.xlane.f32.xlu1 %v5279_v55 }
 0x99d   : > { %v8581_v40 = vpop.eup %7183 }
 0x99e   : > { %v5276_v34 = vsel %vm609_vm3, %v8581_v40, 0.0 }
 0x99f   : > { %5277 = vadd.xlane.f32.xlu0 %v5276_v34 }
 0x9ac   : > { %5830 = vrot.lane.b32.xlu1 %v7825_v38, %s7443_s7  ;;  %v8967_v38 = vld [vmem:[#allocation35_spill] sm:$0xff] }
 0x9b0   : > { %5916 = vrot.lane.b32.xlu1 %v8303_v20, %s7444_s15 }
 0x9b4   : > { %5920 = vrot.lane.b32.xlu1 %v8305_v44, %s7444_s15 }
 0x9b5   : > { %5754 = vrot.lane.b32.xlu0 %v7830_v39, %s7443_s7  ;;  %v5451_v39 = vpop.permute.xlu1 %5450 }
 0x9b8   : > { %5924 = vrot.lane.b32.xlu1 %v8309_v42, %s7444_s15 }
 0x9b9   : > { %5914 = vrot.lane.b32.xlu0 %v8301_v17, %s7444_s15 }
 0x9bc   : > { %5928 = vrot.lane.b32.xlu1 %v8313_v29, %s7444_s15 }
 0x9bd   : > { %5918 = vrot.lane.b32.xlu0 %v8307_v54, %s7444_s15 }
 0x9c0   : > { %5948 = vrot.lane.b32.xlu1 %v8515_v63, %s7445_s10  ;;  %v8968_v63 = vld [vmem:[#allocation28_spill] sm:$0xff] }
 0x9c1   : > { %5922 = vrot.lane.b32.xlu0 %v8311_v62, %s7444_s15 }
 0x9c4   : > { %5952 = vrot.lane.b32.xlu1 %v8519_v33, %s7445_s10 }
 0x9c5   : > { %5926 = vrot.lane.b32.xlu0 %v8315_v2, %s7444_s15 }
 0x9c8   : > { %5956 = vrot.lane.b32.xlu1 %v8523_v61, %s7445_s10 }
 0x9c9   : > { %5946 = vrot.lane.b32.xlu0 %v8517_v0, %s7445_s10 }
 0x9cc   : > { %5960 = vrot.lane.b32.xlu1 %v8527_v45, %s7445_s10 }
 0x9cd   : > { %5950 = vrot.lane.b32.xlu0 %v8521_v52, %s7445_s10 }
 0x9d0   : > { %6035 = vrot.lane.b32.xlu1 %v8191_v23, %s7444_s15  ;;  %v5527_v23 = vpop.permute.xlu1 %5526 }
 0x9d1   : > { %5954 = vrot.lane.b32.xlu0 %v8525_v49, %s7445_s10 }
 0x9d4   : > { %6039 = vrot.lane.b32.xlu1 %v8215_v11, %s7444_s15 }
 0x9d5   : > { %5958 = vrot.lane.b32.xlu0 %v8529_v6, %s7445_s10 }
 0x9d8   : > { %6043 = vrot.lane.b32.xlu1 %v8227_v43, %s7444_s15 }
 0x9d9   : > { %6037 = vrot.lane.b32.xlu0 %v8194_v46, %s7444_s15  ;;  %v5679_v46 = vpop.permute.xlu1 %5678 }
 0x9dc   : > { %6047 = vrot.lane.b32.xlu1 %v8244_v5, %s7444_s15 }
 0x9dd   : > { %6041 = vrot.lane.b32.xlu0 %v8204_v9, %s7444_s15  ;;  %v5603_v9 = vpop.permute.xlu0 %5602 }
 0x9e0   : > { %6059 = vrot.lane.b32.xlu1 %v8408_v41, %s7445_s10 }
 0x9e1   : > { %6045 = vrot.lane.b32.xlu0 %v8218_v56, %s7444_s15 }
 0x9e4   : > { %6063 = vrot.lane.b32.xlu1 %v8428_v14, %s7445_s10 }
 0x9e5   : > { %6049 = vrot.lane.b32.xlu0 %v8967_v38, %s7444_s15 }
 0x9e8   : > { %6067 = vrot.lane.b32.xlu1 %v8440_v57, %s7445_s10 }
 0x9e9   : > { %6061 = vrot.lane.b32.xlu0 %v8404_v37, %s7445_s10 }
 0x9ec   : > { %6071 = vrot.lane.b32.xlu1 %v8465_v48, %s7445_s10 }
 0x9ed   : > { %6065 = vrot.lane.b32.xlu0 %v8419_v24, %s7445_s10 }
 0x9f1   : > { %6069 = vrot.lane.b32.xlu0 %v8432_v50, %s7445_s10 }
 0x9f5   : > { %6073 = vrot.lane.b32.xlu0 %v8456_v18, %s7445_s10 }
 0xa18   : > { %v5263_v11 = vpop.xlane.xlu1 %5262 }
 0xa19   : > { %7185 = vrcp.f32 %v5263_v11 }
 0xa1c   : > { %v5260_v56 = vpop.xlane.xlu0 %5259 }
 0xa1d   : > { %7187 = vrcp.f32 %v5260_v56 }
 0xa20   : > { %v5269_v43 = vpop.xlane.xlu1 %5268 }
 0xa21   : > { %7189 = vrcp.f32 %v5269_v43 }
 0xa23   : > { %v7186_v5 = vpop.eup %7185 }
 0xa24   : > { %v5266_v17 = vpop.xlane.xlu0 %5265  ;;  %v5275_v20 = vpop.xlane.xlu1 %5274  ;;  %v5291_v44 = vmul.f32 %v7186_v5, %v8551_v35 }
 0xa25   : > { %7191 = vrcp.f32 %v5266_v17 }
 0xa26   : > { %7193 = vrcp.f32 %v5275_v20  ;;  %6085 = vrot.lane.b32.xlu1 %v5291_v44, %s7446_s28  ;;  %6937 = vmatmul.mubr.msk.f32.vlgmr.msra.gmra.mrb[64].mxu0 %vm609_vm3, %v5291_v44 }
 0xa27   : > { %v7188_v54 = vpop.eup %7187  ;;  %6945 = vmatpush3.msra.mxu0 %v5527_v23  ;;  %6946 = vmatprep.mubr.msk.f32.mxu0 %vm7436_vm2, %v8966_v25 }
 0xa28   : > { %v5272_v42 = vpop.xlane.xlu0 %5271  ;;  %v5281_v62 = vpop.xlane.xlu1 %5280  ;;  %v5290_v29 = vmul.f32 %v7188_v54, %v8556_v60  ;;  %6954 = vmatprep.subr.mxu0 %v8966_v25  ;;  %v8972_v60 = vld [vmem:[#allocation32_spill] sm:$0xff] }
 0xa29   : > { %7195 = vrcp.f32 %v5272_v42 }
 0xa2a   : > { %7197 = vrcp.f32 %v5281_v62  ;;  %6083 = vrot.lane.b32.xlu0 %v5290_v29, %s7446_s28  ;;  %6932 = vmatmul.mubr.msk.f32.vlgmr.msra.gmra.mrb[64].mxu1 %vm609_vm3, %v5290_v29 }
 0xa2b   : > { %v7190_v2 = vpop.eup %7189  ;;  %6940 = vmatpush3.msra.mxu1 %v5451_v39  ;;  %6941 = vmatprep.mubr.msk.f32.mxu1 %vm7436_vm2, %v8966_v25 }
 0xa2c   : > { %v5278_v37 = vpop.xlane.xlu0 %5277  ;;  %v5831_v41 = vpop.permute.xlu1 %5830  ;;  %v5293_v24 = vmul.f32 %v7190_v2, %v8560_v22  ;;  %6949 = vmatprep.subr.mxu1 %v8966_v25 }
 0xa2d   : > { %7199 = vrcp.f32 %v5278_v37 }
 0xa2e   : > { %6089 = vrot.lane.b32.xlu1 %v5293_v24, %s7446_s28  ;;  %6947 = vmatmul.mubr.msk.f32.vlgmr.msra.gmra.mrb[66].mxu0 %vm609_vm3, %v5293_v24 }
 0xa2f   : > { %v7192_v14 = vpop.eup %7191  ;;  %6955 = vmatpush3.msra.mxu0 %v5679_v46  ;;  %6956 = vmatprep.mubr.msk.f32.mxu0 %vm7436_vm2, %v8966_v25 }
 0xa30   : > { %v7194_v50 = vpop.eup %7193  ;;  %v5755_v57 = vpop.permute.xlu0 %5754  ;;  %6964 = vmatprep.subr.mxu0 %v8966_v25  ;;  %v5292_v48 = vmul.f32 %v7192_v14, %v8567_v26  ;;  %v8975_v26 = vld [vmem:[#allocation33_spill] sm:$0xff] }
 0xa31   : > { %v5917_v18 = vpop.permute.xlu1 %5916  ;;  %v5295_v33 = vmul.f32 %v7194_v50, %v8564_v28  ;;  %v8976_v14 = vld [vmem:[#allocation25_spill] sm:$0xff] }
 0xa32   : > { %v6003_v0 = vsel %vm609_vm3, %v8968_v63, %v5917_v18  ;;  %6087 = vrot.lane.b32.xlu0 %v5292_v48, %s7446_s28  ;;  %6942 = vmatmul.mubr.msk.f32.vlgmr.msra.gmra.mrb[66].mxu1 %vm609_vm3, %v5292_v48  ;;  %v8977_v63 = vld [vmem:[#allocation26_spill] sm:$0xff] }
 0xa33   : > { %v7196_v52 = vpop.eup %7195  ;;  %6950 = vmatpush3.msra.mxu1 %v5603_v9  ;;  %6093 = vrot.lane.b32.xlu1 %v5295_v33, %s7446_s28 }
 0xa34   : > { %v7198_v61 = vpop.eup %7197  ;;  %6957 = vmatmul.mubr.msk.f32.vlgmr.msra.gmra.mrb[68].mxu0 %vm609_vm3, %v5295_v33  ;;  %v5915_v49 = vpop.permute.xlu0 %5914  ;;  %6951 = vmatprep.mubr.msk.f32.mxu1 %vm7436_vm2, %v8966_v25  ;;  %v5294_v6 = vmul.f32 %v7196_v52, %v8575_v36 }
 0xa35   : > { %v5921_v45 = vpop.permute.xlu1 %5920  ;;  %v8667_v59 = vmul.f32 %v7198_v61, %v8573_v31  ;;  %6965 = vmatpush3.msra.mxu0 %v5831_v41  ;;  %v6002_v27 = vsel %vm609_vm3, %v8969_v3, %v5915_v49  ;;  %6959 = vmatprep.subr.mxu1 %v8966_v25  ;;  %v8978_v61 = vld [vmem:[#allocation20_spill] sm:$0xff] }
 0xa36   : > { %v6005_v35 = vsel %vm609_vm3, %v8970_v53, %v5921_v45  ;;  %6966 = vmatprep.mubr.msk.f32.mxu0 %vm7436_vm2, %v8966_v25  ;;  %6091 = vrot.lane.b32.xlu0 %v5294_v6, %s7446_s28 }
 0xa37   : > { %v7200_v4 = vpop.eup %7199  ;;  %6952 = vmatmul.mubr.msk.f32.vlgmr.msra.gmra.mrb[68].mxu1 %vm609_vm3, %v5294_v6 }
 0xa38   : > { %v8679_v13 = vmul.f32 %v7200_v4, %v8581_v40  ;;  %6960 = vmatpush3.msra.mxu1 %v5755_v57  ;;  %6967 = vmatmul.mubr.msk.f32.vlgmr.msra.gmra.mrb[70].mxu0 %vm609_vm3, %v8667_v59  ;;  %v5919_v12 = vpop.permute.xlu0 %5918 }
 0xa39   : > { %v5925_v10 = vpop.permute.xlu1 %5924  ;;  %v6004_v15 = vsel %vm609_vm3, %v8971_v8, %v5919_v12  ;;  %6961 = vmatprep.mubr.msk.f32.mxu1 %vm7436_vm2, %v8966_v25 }
 0xa3a   : > { %v6007_v1 = vsel %vm609_vm3, %v8972_v60, %v5925_v10  ;;  %v8980_v10 = vld [vmem:[#allocation22_spill] sm:$0xff] }
 0xa3b   : > { %6962 = vmatmul.mubr.msk.f32.vlgmr.msra.gmra.mrb[70].mxu1 %vm609_vm3, %v8679_v13 }
 0xa3c   : > { %v5923_v47 = vpop.permute.xlu0 %5922 }
 0xa3d   : > { %v5929_v7 = vpop.permute.xlu1 %5928  ;;  %v6006_v22 = vsel %vm609_vm3, %v8973_v21, %v5923_v47  ;;  %v8981_v47 = vld [vmem:[#allocation21_spill] sm:$0xff]  ;;  %v8982_v21 = vld [vmem:[#allocation24_spill] sm:$0xff] }
 0xa3e   : > { %v6009_v19 = vsel %vm609_vm3, %v8974_v51, %v5929_v7 }
 0xa40   : > { %v5927_v58 = vpop.permute.xlu0 %5926 }
 0xa41   : > { %v5949_v28 = vpop.permute.xlu1 %5948  ;;  %v6008_v16 = vsel %vm609_vm3, %v8975_v26, %v5927_v58 }
 0xa42   : > { %v8698_v32 = vsel %vm479_vm0, %v6003_v0, %v5949_v28 }
 0xa44   : > { %v5947_v25 = vpop.permute.xlu0 %5946 }
 0xa45   : > { %v5953_v31 = vpop.permute.xlu1 %5952  ;;  %v8701_v36 = vsel %vm479_vm0, %v6002_v27, %v5947_v25  ;;  %v8979_v27 = vld [vmem:[#allocation19_spill] sm:$0xff] }
 0xa46   : > { %v8704_v30 = vsel %vm479_vm0, %v6005_v35, %v5953_v31  ;;  %v8983_v25 = vld [vmem:[#allocation23_spill] sm:$0xff] }
 0xa48   : > { %v5951_v55 = vpop.permute.xlu0 %5950 }
 0xa49   : > { %v5957_v40 = vpop.permute.xlu1 %5956  ;;  %v8707_v34 = vsel %vm479_vm0, %v6004_v15, %v5951_v55 }
 0xa4a   : > { %v8710_v38 = vsel %vm479_vm0, %v6007_v1, %v5957_v40 }
 0xa4c   : > { %v5955_v39 = vpop.permute.xlu0 %5954 }
 0xa4d   : > { %v5961_v23 = vpop.permute.xlu1 %5960  ;;  %v8713_v46 = vsel %vm479_vm0, %v6006_v22, %v5955_v39 }
 0xa4e   : > { %v8716_v9 = vsel %vm479_vm0, %v6009_v19, %v5961_v23 }
 0xa50   : > { %v5959_v11 = vpop.permute.xlu0 %5958 }
 0xa51   : > { %v6036_v56 = vpop.permute.xlu1 %6035  ;;  %v8719_v43 = vsel %vm479_vm0, %v6008_v16, %v5959_v11 }
 0xa52   : > { %v6107_v53 = vsel %vm609_vm3, %v8979_v27, %v6036_v56 }
 0xa54   : > { %v6038_v5 = vpop.permute.xlu0 %6037 }
 0xa55   : > { %v6040_v17 = vpop.permute.xlu1 %6039  ;;  %v6108_v49 = vsel %vm609_vm3, %v8978_v61, %v6038_v5 }
 0xa56   : > { %v6109_v7 = vsel %vm609_vm3, %v8981_v47, %v6040_v17 }
 0xa58   : > { %v6042_v20 = vpop.permute.xlu0 %6041 }
 0xa59   : > { %v6044_v44 = vpop.permute.xlu1 %6043  ;;  %v6110_v8 = vsel %vm609_vm3, %v8980_v10, %v6042_v20 }
 0xa5a   : > { %v6111_v31 = vsel %vm609_vm3, %v8983_v25, %v6044_v44 }
 0xa5c   : > { %v6046_v54 = vpop.permute.xlu0 %6045 }
 0xa5d   : > { %v6048_v42 = vpop.permute.xlu1 %6047  ;;  %v6112_v22 = vsel %vm609_vm3, %v8982_v21, %v6046_v54 }
 0xa5e   : > { %v6113_v50 = vsel %vm609_vm3, %v8976_v14, %v6048_v42 }
 0xa60   : > { %v6050_v62 = vpop.permute.xlu0 %6049 }
 0xa61   : > { %v6060_v29 = vpop.permute.xlu1 %6059  ;;  %v6114_v0 = vsel %vm609_vm3, %v8977_v63, %v6050_v62 }
 0xa62   : > { %v6115_v35 = vsel %vm479_vm0, %v6107_v53, %v6060_v29 }
 0xa64   : > { %v6062_v2 = vpop.permute.xlu0 %6061 }
 0xa65   : > { %v6064_v37 = vpop.permute.xlu1 %6063  ;;  %v6116_v45 = vsel %vm479_vm0, %v6108_v49, %v6062_v2 }
 0xa66   : > { %v6117_v51 = vsel %vm479_vm0, %v6109_v7, %v6064_v37 }
 0xa68   : > { %v6066_v41 = vpop.permute.xlu0 %6065 }
 0xa69   : > { %v6068_v24 = vpop.permute.xlu1 %6067  ;;  %v6118_v15 = vsel %vm479_vm0, %v6110_v8, %v6066_v41 }
 0xa6a   : > { %v6119_v55 = vsel %vm479_vm0, %v6111_v31, %v6068_v24 }
 0xa6c   : > { %v6070_v57 = vpop.permute.xlu0 %6069 }
 0xa6d   : > { %v6072_v18 = vpop.permute.xlu1 %6071  ;;  %v6120_v58 = vsel %vm479_vm0, %v6112_v22, %v6070_v57 }
 0xa6e   : > { %v8724_v48 = vsel %vm479_vm0, %v6113_v50, %v6072_v18 }
 0xa70   : > { %v6074_v33 = vpop.permute.xlu0 %6073 }
 0xa71   : > { %v8729_v52 = vsel %vm479_vm0, %v6114_v0, %v6074_v33 }
 0xa98   : > { %v6086_v6 = vpop.permute.xlu1 %6085 }
 0xa99   : > { %v6124_v3 = vsel %vm6018_vm4, %v6116_v45, %v6086_v6 }
 0xa9a   : > { %6132 = vst.msk [vmem:[%s8736_s0 + $0x8] sm:$0xff] %vm347_vm1, %v6124_v3 }
 0xa9c   : > { %v6084_v4 = vpop.permute.xlu0 %6083 }
 0xa9d   : > { %v6123_v12 = vsel %vm6018_vm4, %v6115_v35, %v6084_v4 }
 0xa9e   : > { %6131 = vst.msk [vmem:[%s8736_s0] sm:$0xff] %vm347_vm1, %v6123_v12 }
 0xaa0   : > { %v6090_v60 = vpop.permute.xlu1 %6089 }
 0xaa1   : > { %v6126_v1 = vsel %vm6018_vm4, %v6118_v15, %v6090_v60 }
 0xaa2   : > { %6134 = vst.msk [vmem:[%s8736_s0 + $0x18] sm:$0xff] %vm347_vm1, %v6126_v1 }
 0xaa4   : > { %v6088_v19 = vpop.permute.xlu0 %6087 }
 0xaa5   : > { %v6125_v28 = vsel %vm6018_vm4, %v6117_v51, %v6088_v19  ;;  %v6094_v26 = vpop.permute.xlu1 %6093 }
 0xaa6   : > { %6133 = vst.msk [vmem:[%s8736_s0 + $0x10] sm:$0xff] %vm347_vm1, %v6125_v28  ;;  %v6128_v16 = vsel %vm6018_vm4, %v6120_v58, %v6094_v26 }
 0xaa7   : > { %6136 = vst.msk [vmem:[%s8736_s0 + $0x28] sm:$0xff] %vm347_vm1, %v6128_v16 }
 0xaa8   : > { %v6092_v40 = vpop.permute.xlu0 %6091 }
 0xaa9   : > { %v6127_v39 = vsel %vm6018_vm4, %v6119_v55, %v6092_v40 }
 0xaaa   : > { %6135 = vst.msk [vmem:[%s8736_s0 + $0x20] sm:$0xff] %vm347_vm1, %v6127_v39 }
 0xaf9   : > { %v5446_v23 = vpop.f32.mrb[64].mxu0 }
 0xafa   : > { %5980 = vrot.lane.b32.xlu1 %v5446_v23, %s7446_s28  ;;  %v6938_v11 = vpop.f32.mrb[65].mxu0 }
 0xafd   : > { %v5370_v56 = vpop.f32.mrb[64].mxu1 }
 0xafe   : > { %v6933_v5 = vpop.f32.mrb[65].mxu1  ;;  %5978 = vrot.lane.b32.xlu0 %v5370_v56, %s7446_s28 }
 0xb01   : > { %v5598_v17 = vpop.f32.mrb[66].mxu0 }
 0xb02   : > { %5984 = vrot.lane.b32.xlu1 %v5598_v17, %s7446_s28  ;;  %v6948_v20 = vpop.f32.mrb[67].mxu0 }
 0xb05   : > { %v5522_v44 = vpop.f32.mrb[66].mxu1 }
 0xb06   : > { %5982 = vrot.lane.b32.xlu0 %v5522_v44, %s7446_s28  ;;  %v6943_v54 = vpop.f32.mrb[67].mxu1 }
 0xb07   : > { %v5750_v42 = vpop.f32.mrb[68].mxu0 }
 0xb08   : > { %5988 = vrot.lane.b32.xlu1 %v5750_v42, %s7446_s28  ;;  %v6958_v62 = vpop.f32.mrb[69].mxu0 }
 0xb0a   : > { %v5674_v29 = vpop.f32.mrb[68].mxu1 }
 0xb0b   : > { %v5902_v2 = vpop.f32.mrb[70].mxu0  ;;  %5986 = vrot.lane.b32.xlu0 %v5674_v29, %s7446_s28  ;;  %v6953_v37 = vpop.f32.mrb[69].mxu1 }
 0xb0c   : > { %5992 = vrot.lane.b32.xlu1 %v5902_v2, %s7446_s28  ;;  %v6968_v41 = vpop.f32.mrb[71].mxu0 }
 0xb0e   : > { %v5826_v24 = vpop.f32.mrb[70].mxu1 }
 0xb0f   : > { %5990 = vrot.lane.b32.xlu0 %v5826_v24, %s7446_s28  ;;  %v6963_v14 = vpop.f32.mrb[71].mxu1 }
 0xb10   : > { %6097 = vrot.lane.b32.xlu1 %v8667_v59, %s7446_s28 }
 0xb13   : > { %6095 = vrot.lane.b32.xlu0 %v8679_v13, %s7446_s28 }
 0xb6c   : > { %v5981_v50 = vpop.permute.xlu1 %5980 }
 0xb6d   : > { %v6020_v57 = vsel %vm6018_vm4, %v8698_v32, %v5981_v50 }
 0xb6e   : > { %6028 = vst.msk [vmem:[%s315_s12 + $0x8] sm:$0xff] %vm347_vm1, %v6020_v57 }
 0xb70   : > { %v5979_v18 = vpop.permute.xlu0 %5978 }
 0xb71   : > { %v6019_v63 = vsel %vm6018_vm4, %v8701_v36, %v5979_v18 }
 0xb72   : > { %6027 = vst.msk [vmem:[%s315_s12] sm:$0xff] %vm347_vm1, %v6019_v63 }
 0xb74   : > { %v5985_v0 = vpop.permute.xlu1 %5984 }
 0xb75   : > { %v6022_v59 = vsel %vm6018_vm4, %v8704_v30, %v5985_v0 }
 0xb76   : > { %6030 = vst.msk [vmem:[%s315_s12 + $0x18] sm:$0xff] %vm347_vm1, %v6022_v59 }
 0xb78   : > { %v5983_v13 = vpop.permute.xlu0 %5982 }
 0xb79   : > { %v6021_v32 = vsel %vm6018_vm4, %v8707_v34, %v5983_v13 }
 0xb7a   : > { %6029 = vst.msk [vmem:[%s315_s12 + $0x10] sm:$0xff] %vm347_vm1, %v6021_v32  ;;  %v5989_v33 = vpop.permute.xlu1 %5988 }
 0xb7b   : > { %v6024_v36 = vsel %vm6018_vm4, %v8710_v38, %v5989_v33 }
 0xb7c   : > { %6032 = vst.msk [vmem:[%s315_s12 + $0x28] sm:$0xff] %vm347_vm1, %v6024_v36 }
 0xb7d   : > { %v5987_v61 = vpop.permute.xlu0 %5986 }
 0xb7e   : > { %v6023_v30 = vsel %vm6018_vm4, %v8713_v46, %v5987_v61  ;;  %v5993_v49 = vpop.permute.xlu1 %5992 }
 0xb7f   : > { %6031 = vst.msk [vmem:[%s315_s12 + $0x20] sm:$0xff] %vm347_vm1, %v6023_v30  ;;  %v6026_v34 = vsel %vm6018_vm4, %v8716_v9, %v5993_v49 }
 0xb80   : > { %6034 = vst.msk [vmem:[%s315_s12 + $0x38] sm:$0xff] %vm347_vm1, %v6026_v34 }
 0xb81   : > { %v5991_v38 = vpop.permute.xlu0 %5990 }
 0xb82   : > { %v6025_v46 = vsel %vm6018_vm4, %v8719_v43, %v5991_v38  ;;  %v6098_v45 = vpop.permute.xlu1 %6097 }
 0xb83   : > { %6033 = vst.msk [vmem:[%s315_s12 + $0x30] sm:$0xff] %vm347_vm1, %v6025_v46  ;;  %v6130_v9 = vsel %vm6018_vm4, %v8729_v52, %v6098_v45 }
 0xb84   : > { %6138 = vst.msk [vmem:[%s8736_s0 + $0x38] sm:$0xff] %vm347_vm1, %v6130_v9 }
 0xb85   : > { %7330 = shalt.err (!%p7327_p7)
}
 0xb86   : > { %s7331_s7 = scalar_lea.hbm %s8813_s24, 1024  ;;  %s7335_s12 = scalar_lea.hbm %s8911_s4, 2048 }
 0xb87   : > { %p7332_p9 = scmp.ne.s32.totalorder %s8813_s24, %s7331_s7  ;;  %p7336_p11 = scmp.lt.u32.totalorder %s8813_s24, %s8911_s4 }
 0xb88   : > { %p7337_p2 = scmp.lt.u32.totalorder %s7335_s12, %s7331_s7  ;;  %p7339_p1 = scmp.lt.u32.totalorder %s7331_s7, %s8813_s24 }
 0xb89   : > { %p7333_p0 = pnand %p7332_p9, %p8984_p13 }
 0xb8a   : > { %p7338_p12 = por %p7337_p2, %p7336_p11 }
 0xb8b   : > { %p7334_p8 = pneg %p7333_p0 }
 0xb8c   : > { %p7340_p6 = por %p7339_p1, %p7338_p12 }
 0xb8e   : > { %p7341_p10 = pnand %p7340_p6, %p7334_p8 }
 0xb90   : > { %7344 = shalt.err (!%p7341_p10)
}
 0xb91   : > { %s7448_s11 = smov 128   ;;  %v6096_v43 = vpop.permute.xlu0 %6095  ;;  %s8856_s16 = scalar_lea.hbm %s8912_s5, %s6461_s30 }
 0xb92   : > { %6993 = dma.vmem_to_hbm [thread:$0]  (%p8984_p13), %s8805_s6, 1024, %s8813_s24, %s6140_s8, %s7448_s11, %s7448_s11, %s7444_s15   ;;  %v6129_v52 = vsel %vm6018_vm4, %v8724_v48, %v6096_v43 }
 0xb93   : > { %6137 = vst.msk [vmem:[%s8736_s0 + $0x30] sm:$0xff] %vm347_vm1, %v6129_v52  ;;  %s6145_s7 = scalar_lea.sflag [#allocation12], %s7701_s13  ;;  %s7345_s10 = scalar_lea.vmem %s8817_s26, 1024 }
 0xb94   : > { %p7346_p4 = scmp.ne.s32.totalorder %s8817_s26, %s7345_s10  ;;  %s7449_s28 = smov [#allocation11]  }
 0xb95   : > { %s7349_s6 = sshll.u32 %s7449_s28, 4  ;;  %s7350_s6 = int_to_ptr.vmem [resolvable:$false] %s7349_s6 }
 0xb96   : > { %p7347_p5 = pnand %p7346_p4, %p8984_p13  ;;  %s7351_s22 = scalar_lea.vmem %s7350_s6, 2048 }
 0xb97   : > { %p7352_p7 = scmp.lt.s32.totalorder %s8817_s26, %s7350_s6  ;;  %p7353_p9 = scmp.lt.s32.totalorder %s7351_s22, %s7345_s10 }
 0xb98   : > { %p7348_p3 = pneg %p7347_p5 }
 0xb99   : > { %p7354_p0 = por %p7353_p9, %p7352_p7 }
 0xb9b   : > { %p7355_p8 = pnand %p7354_p0, %p7348_p3 }
 0xb9d   : > { %7358 = shalt.err (!%p7355_p8)
}
 0xb9e   : > { %s7359_s0 = scalar_lea.hbm %s8856_s16, 1024  ;;  %s7363_s8 = scalar_lea.hbm %s8912_s5, 2048 }
 0xb9f   : > { %p7360_p11 = scmp.ne.s32.totalorder %s8856_s16, %s7359_s0  ;;  %p7364_p1 = scmp.lt.u32.totalorder %s8856_s16, %s8912_s5 }
 0xba0   : > { %p7365_p6 = scmp.lt.u32.totalorder %s7363_s8, %s7359_s0  ;;  %p7367_p4 = scmp.lt.u32.totalorder %s7359_s0, %s8856_s16 }
 0xba1   : > { %p7361_p2 = pnand %p7360_p11, %p8984_p13 }
 0xba2   : > { %p7366_p10 = por %p7365_p6, %p7364_p1 }
 0xba3   : > { %p7362_p12 = pneg %p7361_p2 }
 0xba4   : > { %p7368_p5 = por %p7367_p4, %p7366_p10 }
 0xba6   : > { %p7369_p3 = pnand %p7368_p5, %p7362_p12 }
 0xba8   : > { %7372 = shalt.err (!%p7369_p3)
}
 0xba9   : > { %6994 = dma.vmem_to_hbm [thread:$0]  (%p8984_p13), %s8817_s26, 1024, %s8856_s16, %s6145_s7, %s7448_s11, %s7448_s11, %s7444_s15  }
 0xbaa PF: > { %s6189_s9 = sand.u32 1, %s7415_s18   ;;  %p8985_p7 = scmp.ne.s32.totalorder %s8934_s25, 0 }
 0xbab   : > { %p8986_p9 = scmp.ge.s32.totalorder %s7427_s21, 2  ;;  %s6190_s14 = scalar_lea.sflag [#allocation4], %s6189_s9 }
 0xbad   : > { %p7012_p0 = pnand %p8986_p9, %p8985_p7 }
 0xbaf   : > { %7406 = dma.done.wait (!%p7012_p0), %s6190_s14, 1024  }
 0xbb0   : > { %7408 = vsyncadd (!%p7012_p0), %s6190_s14, 4294966272  ;;  %s6199_s23 = scalar_lea.sflag [#allocation12], %s6189_s9 }
 0xbb1   : > { %7410 = dma.done.wait (!%p7012_p0), %s6199_s23, 1024  }
 0xbb2   : > { %7412 = vsyncadd (!%p7012_p0), %s6199_s23, 4294966272  ;;  %p26_p13 = scmp.ge.s32.totalorder %s7596_s29, 4   ;;  %s8987_s18 = smov %s7419_s19 }
 0xbb3   : > { %s8988_s19 = smov %s7423_s20  ;;  %s8989_s20 = smov %s7612_s27 }
 0xbb4   : > { %s8990_s21 = smov %s7596_s29  ;;  %28 = sbr.rel (!%p26_p13) target bundleno = 13 (0xd), region = 119 }
 0xbbb   :  { %6204 = vsyncpa [#allocation3], 1 }
 0xbbc   :  { %6206 = vsyncpa [#allocation3 + $0x1], 1 }
 0xbbd   :  { %6207 = vsyncpa [#allocation6], 1 }
 0xbbe   :  { %6209 = vsyncpa [#allocation6 + $0x1], 1 }
 0xbbf   :  { %6210 = vsyncpa [#allocation9], 1 }
 0xbc0   :  { %6211 = vsyncpa [#allocation4], 1 }
 0xbc1   :  { %6213 = vsyncpa [#allocation4 + $0x1], 1 }
 0xbc2   :  { %6214 = vsyncpa [#allocation12], 1 }
 0xbc3   :  { %6216 = vsyncpa [#allocation12 + $0x1], 1 }

</bundles_post_ra>
